<compile_context>
chip_gen: v5e
topology: v5e:2x2
jax: 0.10.0
libtpu: 0.0.40
codegen_flags: <defaults>
</compile_context>

<pallas_src>
import jax
import jax.numpy as jnp
from jax.experimental import pallas as pl
from jax.experimental.pallas import tpu as pltpu


def _round_up(x, m):
    return (x + m - 1) // m * m


# -----------------------------------------------------------------------------
# Pallas kernel: one full forward step (embed + 3 stacked LSTM cells + Linear)
# -----------------------------------------------------------------------------
def rnn_gen_step_kernel(
    tok_ref,             # (B, 1)      int32 token ids
    embed_ref,           # (Vp, Ep)    bf16 padded embedding table
    h0_ref,              # (3, B, Hp)  f32
    c0_ref,              # (3, B, Hp)  f32
    w0_ref, b0_ref,      # layer 0: (Ep+Hp, 4Hp) bf16, (1, 4Hp) f32
    w1_ref, b1_ref,      # layer 1: (2Hp, 4Hp)   bf16, (1, 4Hp) f32
    w2_ref, b2_ref,      # layer 2: (2Hp, 4Hp)   bf16, (1, 4Hp) f32
    wlin_ref, blin_ref,  # (Hp, Vp) bf16, (1, Vp) f32
    logits_ref,          # (B, Vp)     f32
    hout_ref,            # (3, B, Hp)  f32  (aliased with h0)
    cout_ref,            # (3, B, Hp)  f32  (aliased with c0)
):
    B = tok_ref.shape[0]
    Hp = h0_ref.shape[-1]
    Vp = embed_ref.shape[0]

    # Embedding lookup fused in-kernel: one-hot (B, Vp) @ table (Vp, Ep) on MXU.
    tok = tok_ref[...]                                                 # (B, 1) i32
    onehot = jax.lax.broadcasted_iota(jnp.int32, (B, Vp), 1) == tok    # (B, Vp) bool
    x = jnp.dot(onehot.astype(jnp.bfloat16), embed_ref[...],
                preferred_element_type=jnp.float32)                    # (B, Ep) f32

    def lstm_cell(xh_bf16, c_prev, w_ref, b_ref):
        # Fused gates: single bf16 MXU matmul, f32 accumulation. PyTorch gate
        # order i, f, g, o; each gate block is Hp lanes wide -> aligned slices.
        gates = (jnp.dot(xh_bf16, w_ref[...],
                         preferred_element_type=jnp.float32) + b_ref[...])
        i_g = jax.nn.sigmoid(gates[:, 0 * Hp:1 * Hp])
        f_g = jax.nn.sigmoid(gates[:, 1 * Hp:2 * Hp])
        g_g = jnp.tanh(gates[:, 2 * Hp:3 * Hp])
        o_g = jax.nn.sigmoid(gates[:, 3 * Hp:4 * Hp])
        c_new = f_g * c_prev + i_g * g_g                               # f32
        h_new = o_g * jnp.tanh(c_new)                                  # f32
        return h_new, c_new

    layer_params = ((w0_ref, b0_ref), (w1_ref, b1_ref), (w2_ref, b2_ref))

    layer_in = x.astype(jnp.bfloat16)                                  # (B, Ep)
    for layer, (w_ref, b_ref) in enumerate(layer_params):
        h_prev = h0_ref[layer]                                         # (B, Hp) f32
        c_prev = c0_ref[layer]
        xh = jnp.concatenate([layer_in, h_prev.astype(jnp.bfloat16)], axis=-1)
        h_new, c_new = lstm_cell(xh, c_prev, w_ref, b_ref)
        hout_ref[layer] = h_new
        cout_ref[layer] = c_new
        layer_in = h_new.astype(jnp.bfloat16)

    # Output projection: (B, Hp) @ (Hp, Vp) + (1, Vp); lane-dense (Vp) store.
    logits_ref[...] = (
        jnp.dot(layer_in, wlin_ref[...], preferred_element_type=jnp.float32)
        + blin_ref[...]
    )


# -----------------------------------------------------------------------------
# Parameter construction (PyTorch-like shapes) and one-time preprocessing
# -----------------------------------------------------------------------------
def make_params(key, voc_size, embed_size, hidden_size):
    """Deterministic parameter init mimicking the shapes of the PyTorch module."""
    ks = jax.random.split(key, 16)
    H, E, V = hidden_size, embed_size, voc_size
    bound = 1.0 / jnp.sqrt(H)

    def u(k, shape):
        return jax.random.uniform(k, shape, jnp.float32, -bound, bound)

    params = {
        "embed": jax.random.normal(ks[0], (V, E), jnp.float32) * 0.1,
        # LSTM layer 0 (input = E), layers 1,2 (input = H); PyTorch shapes (4H, in)
        "w_ih": [u(ks[1], (4 * H, E)), u(ks[2], (4 * H, H)), u(ks[3], (4 * H, H))],
        "w_hh": [u(ks[4], (4 * H, H)), u(ks[5], (4 * H, H)), u(ks[6], (4 * H, H))],
        "b_ih": [u(ks[7], (4 * H,)), u(ks[8], (4 * H,)), u(ks[9], (4 * H,))],
        "b_hh": [u(ks[10], (4 * H,)), u(ks[11], (4 * H,)), u(ks[12], (4 * H,))],
        "w_lin": u(ks[13], (V, H)),
        "b_lin": u(ks[14], (V,)),
    }
    return params


def prepare_params(params, hidden_size):
    """One-time prep: transpose, fuse [W_ih;W_hh], fold biases, pad to 128 lanes.

    Returns bf16 weights / f32 biases laid out exactly as the kernel consumes them,
    so the per-step wrapper does zero weight work.
    """
    H = hidden_size
    V, E = params["embed"].shape
    Hp = _round_up(H, 128)
    Ep = _round_up(E, 128)
    Vp = _round_up(V, 128)

    def pack_layer(w_ih, w_hh, b_ih, b_hh, din, din_p):
        # Stacked (din_p + Hp, 4*Hp): rows [0:din] = W_ih^T, rows [din_p:din_p+H] = W_hh^T,
        # each gate's H real columns placed at a 128-aligned offset, rest zero.
        w = jnp.zeros((din_p + Hp, 4 * Hp), jnp.float32)
        b = jnp.zeros((1, 4 * Hp), jnp.float32)
        for g in range(4):
            w = w.at[:din, g * Hp:g * Hp + H].set(w_ih[g * H:(g + 1) * H, :].T)
            w = w.at[din_p:din_p + H, g * Hp:g * Hp + H].set(
                w_hh[g * H:(g + 1) * H, :].T)
            b = b.at[0, g * Hp:g * Hp + H].set(
                b_ih[g * H:(g + 1) * H] + b_hh[g * H:(g + 1) * H])
        return w.astype(jnp.bfloat16), b

    layer_inputs = [(E, Ep), (H, Hp), (H, Hp)]
    ws, bs = [], []
    for l, (din, din_p) in enumerate(layer_inputs):
        w, b = pack_layer(params["w_ih"][l], params["w_hh"][l],
                          params["b_ih"][l], params["b_hh"][l], din, din_p)
        ws.append(w)
        bs.append(b)

    embed_p = (jnp.zeros((Vp, Ep), jnp.float32)
               .at[:V, :E].set(params["embed"]).astype(jnp.bfloat16))
    w_lin_p = (jnp.zeros((Hp, Vp), jnp.float32)
               .at[:H, :V].set(params["w_lin"].T).astype(jnp.bfloat16))
    b_lin_p = jnp.zeros((1, Vp), jnp.float32).at[0, :V].set(params["b_lin"])

    return {
        "embed": embed_p,
        "w": tuple(ws),
        "b": tuple(bs),
        "w_lin": w_lin_p,
        "b_lin": b_lin_p,
        "dims": (V, E, H, Vp, Ep, Hp),
    }


# -----------------------------------------------------------------------------
# Wrappers
# -----------------------------------------------------------------------------
def rnn_gen_step_padded(prep, tokens_2d, h_pad, c_pad):
    """Padded-state fast path (use this directly inside a decode loop).

    tokens_2d: (B, 1) int32; h_pad/c_pad: (3, B, Hp) f32 (aliased in->out).
    Returns (logits_pad (B, Vp) f32, h_pad_new, c_pad_new).
    """
    B = tokens_2d.shape[0]
    V, E, H, Vp, Ep, Hp = prep["dims"]
    vmem = pl.BlockSpec(memory_space=pltpu.MemorySpace.VMEM)
    return pl.pallas_call(
        rnn_gen_step_kernel,
        out_shape=(
            jax.ShapeDtypeStruct((B, Vp), jnp.float32),
            jax.ShapeDtypeStruct((3, B, Hp), jnp.float32),
            jax.ShapeDtypeStruct((3, B, Hp), jnp.float32),
        ),
        in_specs=[vmem] * 12,
        out_specs=(vmem, vmem, vmem),
        # P8: state buffers reused in place (h0 -> h_out, c0 -> c_out).
        input_output_aliases={2: 1, 3: 2},
    )(
        tokens_2d, prep["embed"], h_pad, c_pad,
        prep["w"][0], prep["b"][0],
        prep["w"][1], prep["b"][1],
        prep["w"][2], prep["b"][2],
        prep["w_lin"], prep["b_lin"],
    )


def rnn_gen_forward(prep, tokens, h, c):
    """Equivalent of RNNGen.forward(input, (h, c)) with is_lstm=True.

    tokens: (B,) int; h, c: (3, B, H) f32. Returns (logits (B,V), (h_n, c_n)).
    """
    V, E, H, Vp, Ep, Hp = prep["dims"]
    B = tokens.shape[0]
    tok = tokens.reshape(B, 1).astype(jnp.int32)
    h_pad = jnp.zeros((3, B, Hp), jnp.float32).at[:, :, :H].set(h)
    c_pad = jnp.zeros((3, B, Hp), jnp.float32).at[:, :, :H].set(c)
    logits_p, h_out_p, c_out_p = rnn_gen_step_padded(prep, tok, h_pad, c_pad)
    return logits_p[:, :V], (h_out_p[:, :, :H], c_out_p[:, :, :H])


# -----------------------------------------------------------------------------
# Pure-JAX reference (for correctness check only)
# -----------------------------------------------------------------------------
def rnn_gen_forward_ref(params, tokens, h, c):
    x = jnp.take(params["embed"], tokens, axis=0)
    H = h.shape[-1]
    h_out, c_out = [], []
    layer_in = x
    for l in range(3):
        gates = (
            layer_in @ params["w_ih"][l].T
            + h[l] @ params["w_hh"][l].T
            + params["b_ih"][l]
            + params["b_hh"][l]
        )
        i_g = jax.nn.sigmoid(gates[:, 0 * H:1 * H])
        f_g = jax.nn.sigmoid(gates[:, 1 * H:2 * H])
        g_g = jnp.tanh(gates[:, 2 * H:3 * H])
        o_g = jax.nn.sigmoid(gates[:, 3 * H:4 * H])
        c_new = f_g * c[l] + i_g * g_g
        h_new = o_g * jnp.tanh(c_new)
        h_out.append(h_new)
        c_out.append(c_new)
        layer_in = h_new
    logits = layer_in @ params["w_lin"].T + params["b_lin"]
    return logits, (jnp.stack(h_out), jnp.stack(c_out))


if __name__ == "__main__":
    # Small shapes consistent with the module (voc.size, embed_size, hidden_size);
    # deliberately NOT multiples of 128 to exercise the lane-padding path.
    B, V, E, H = 8, 50, 32, 64

    key = jax.random.PRNGKey(0)
    k_par, k_tok, k_h, k_c = jax.random.split(key, 4)

    params = make_params(k_par, voc_size=V, embed_size=E, hidden_size=H)
    prep = prepare_params(params, hidden_size=H)   # one-time weight prep (hoisted)

    tokens = jax.random.randint(k_tok, (B,), 0, V, dtype=jnp.int32)
    h0 = jax.random.uniform(k_h, (3, B, H), jnp.float32)   # like init_h's torch.rand
    c0 = jax.random.uniform(k_c, (3, B, H), jnp.float32)

    logits, (h_out, c_out) = rnn_gen_forward(prep, tokens, h0, c0)
    jax.block_until_ready((logits, h_out, c_out))

    ref_logits, (ref_h, ref_c) = rnn_gen_forward_ref(params, tokens, h0, c0)
    assert logits.shape == (B, V)
    assert h_out.shape == (3, B, H) and c_out.shape == (3, B, H)
    # bf16 MXU operands (f32 accumulation) vs the fp32 reference -> loose tolerances.
    assert jnp.allclose(logits, ref_logits, atol=5e-2, rtol=5e-2)
    assert jnp.allclose(h_out, ref_h, atol=2e-2, rtol=2e-2)
    assert jnp.allclose(c_out, ref_c, atol=2e-2, rtol=2e-2)

    print("KERNEL_OK")
</pallas_src>

<mosaic_0001>
module attributes {stable_mosaic.version = 11 : i64} {
  func.func @rnn_gen_step_kernel(%arg0: memref<8x1xi32, #tpu.memory_space<vmem>>, %arg1: memref<128x128xbf16, #tpu.memory_space<vmem>>, %arg2: memref<3x8x128xf32, #tpu.memory_space<vmem>>, %arg3: memref<3x8x128xf32, #tpu.memory_space<vmem>>, %arg4: memref<256x512xbf16, #tpu.memory_space<vmem>>, %arg5: memref<1x512xf32, #tpu.memory_space<vmem>>, %arg6: memref<256x512xbf16, #tpu.memory_space<vmem>>, %arg7: memref<1x512xf32, #tpu.memory_space<vmem>>, %arg8: memref<256x512xbf16, #tpu.memory_space<vmem>>, %arg9: memref<1x512xf32, #tpu.memory_space<vmem>>, %arg10: memref<128x128xbf16, #tpu.memory_space<vmem>>, %arg11: memref<1x128xf32, #tpu.memory_space<vmem>>, %arg12: memref<8x128xf32, #tpu.memory_space<vmem>>, %arg13: memref<3x8x128xf32, #tpu.memory_space<vmem>>, %arg14: memref<3x8x128xf32, #tpu.memory_space<vmem>>) attributes {dimension_semantics = [], scalar_prefetch = 0 : i64, scratch_operands = 0 : i64, tpu.core_type = #tpu.core_type<tc>} {
    %c0 = arith.constant 0 : index
    %c0_0 = arith.constant 0 : index
    %0 = vector.load %arg0[%c0, %c0_0] : memref<8x1xi32, #tpu.memory_space<vmem>>, vector<8x1xi32>
    %1 = tpu.iota {dimensions = array<i32: 1>} : vector<8x128xi32>
    %2 = vector.broadcast %0 : vector<8x1xi32> to vector<8x128xi32>
    %3 = arith.cmpi eq, %1, %2 : vector<8x128xi32>
    %4 = arith.extui %3 : vector<8x128xi1> to vector<8x128xi32>
    %5 = arith.sitofp %4 : vector<8x128xi32> to vector<8x128xf32>
    %6 = arith.truncf %5 : vector<8x128xf32> to vector<8x128xbf16>
    %c0_1 = arith.constant 0 : index
    %c0_2 = arith.constant 0 : index
    %7 = vector.load %arg1[%c0_1, %c0_2] : memref<128x128xbf16, #tpu.memory_space<vmem>>, vector<128x128xbf16>
    %cst = arith.constant dense<0.000000e+00> : vector<8x128xf32>
    %8 = tpu.matmul %6, %7, %cst {dimension_numbers = #tpu.dot_dimension_numbers<[1], [0], [0], [1], [0, 0, 1, 1], [], []>} : vector<8x128xbf16>, vector<128x128xbf16>, vector<8x128xf32> -> vector<8x128xf32>
    %9 = arith.truncf %8 : vector<8x128xf32> to vector<8x128xbf16>
    %c0_3 = arith.constant 0 : index
    %c0_4 = arith.constant 0 : index
    %c0_5 = arith.constant 0 : index
    %10 = vector.load %arg2[%c0_3, %c0_4, %c0_5] : memref<3x8x128xf32, #tpu.memory_space<vmem>>, vector<1x8x128xf32>
    %11 = vector.shape_cast %10 : vector<1x8x128xf32> to vector<8x128xf32>
    %c0_6 = arith.constant 0 : index
    %c0_7 = arith.constant 0 : index
    %c0_8 = arith.constant 0 : index
    %12 = vector.load %arg3[%c0_6, %c0_7, %c0_8] : memref<3x8x128xf32, #tpu.memory_space<vmem>>, vector<1x8x128xf32>
    %13 = vector.shape_cast %12 : vector<1x8x128xf32> to vector<8x128xf32>
    %14 = arith.truncf %11 : vector<8x128xf32> to vector<8x128xbf16>
    %15 = tpu.concatenate %9, %14 in 1 : vector<8x128xbf16>, vector<8x128xbf16> -> vector<8x256xbf16>
    %c0_9 = arith.constant 0 : index
    %c0_10 = arith.constant 0 : index
    %16 = vector.load %arg4[%c0_9, %c0_10] : memref<256x512xbf16, #tpu.memory_space<vmem>>, vector<256x512xbf16>
    %cst_11 = arith.constant dense<0.000000e+00> : vector<8x512xf32>
    %17 = tpu.matmul %15, %16, %cst_11 {dimension_numbers = #tpu.dot_dimension_numbers<[1], [0], [0], [1], [0, 0, 1, 1], [], []>} : vector<8x256xbf16>, vector<256x512xbf16>, vector<8x512xf32> -> vector<8x512xf32>
    %c0_12 = arith.constant 0 : index
    %c0_13 = arith.constant 0 : index
    %18 = vector.load %arg5[%c0_12, %c0_13] : memref<1x512xf32, #tpu.memory_space<vmem>>, vector<1x512xf32>
    %19 = vector.broadcast %18 : vector<1x512xf32> to vector<8x512xf32>
    %20 = arith.addf %17, %19 : vector<8x512xf32>
    %21 = vector.extract_strided_slice %20 {offsets = [0, 0], sizes = [8, 128], strides = [1, 1]} : vector<8x512xf32> to vector<8x128xf32>
    %22 = arith.negf %21 : vector<8x128xf32>
    %23 = math.exp %22 : vector<8x128xf32>
    %cst_14 = arith.constant 1.000000e+00 : f32
    %24 = vector.broadcast %cst_14 : f32 to vector<8x128xf32>
    %25 = arith.addf %24, %23 : vector<8x128xf32>
    %26 = arith.divf %24, %25 : vector<8x128xf32>
    %27 = vector.extract_strided_slice %20 {offsets = [0, 128], sizes = [8, 128], strides = [1, 1]} : vector<8x512xf32> to vector<8x128xf32>
    %28 = arith.negf %27 : vector<8x128xf32>
    %29 = math.exp %28 : vector<8x128xf32>
    %cst_15 = arith.constant 1.000000e+00 : f32
    %30 = vector.broadcast %cst_15 : f32 to vector<8x128xf32>
    %31 = arith.addf %30, %29 : vector<8x128xf32>
    %32 = arith.divf %30, %31 : vector<8x128xf32>
    %33 = vector.extract_strided_slice %20 {offsets = [0, 256], sizes = [8, 128], strides = [1, 1]} : vector<8x512xf32> to vector<8x128xf32>
    %34 = math.tanh %33 : vector<8x128xf32>
    %35 = vector.extract_strided_slice %20 {offsets = [0, 384], sizes = [8, 128], strides = [1, 1]} : vector<8x512xf32> to vector<8x128xf32>
    %36 = arith.negf %35 : vector<8x128xf32>
    %37 = math.exp %36 : vector<8x128xf32>
    %cst_16 = arith.constant 1.000000e+00 : f32
    %38 = vector.broadcast %cst_16 : f32 to vector<8x128xf32>
    %39 = arith.addf %38, %37 : vector<8x128xf32>
    %40 = arith.divf %38, %39 : vector<8x128xf32>
    %41 = arith.mulf %32, %13 : vector<8x128xf32>
    %42 = arith.mulf %26, %34 : vector<8x128xf32>
    %43 = arith.addf %41, %42 : vector<8x128xf32>
    %44 = math.tanh %43 : vector<8x128xf32>
    %45 = arith.mulf %40, %44 : vector<8x128xf32>
    %c0_17 = arith.constant 0 : index
    %c0_18 = arith.constant 0 : index
    %c0_19 = arith.constant 0 : index
    %46 = vector.load %arg13[%c0_17, %c0_18, %c0_19] : memref<3x8x128xf32, #tpu.memory_space<vmem>>, vector<1x8x128xf32>
    %47 = vector.shape_cast %46 : vector<1x8x128xf32> to vector<8x128xf32>
    %48 = vector.shape_cast %45 : vector<8x128xf32> to vector<1x8x128xf32>
    tpu.vector_store %arg13[%c0_17, %c0_18, %c0_19], %48 {strides = array<i32>} : memref<3x8x128xf32, #tpu.memory_space<vmem>>, vector<1x8x128xf32>,
    %c0_20 = arith.constant 0 : index
    %c0_21 = arith.constant 0 : index
    %c0_22 = arith.constant 0 : index
    %49 = vector.load %arg14[%c0_20, %c0_21, %c0_22] : memref<3x8x128xf32, #tpu.memory_space<vmem>>, vector<1x8x128xf32>
    %50 = vector.shape_cast %49 : vector<1x8x128xf32> to vector<8x128xf32>
    %51 = vector.shape_cast %43 : vector<8x128xf32> to vector<1x8x128xf32>
    tpu.vector_store %arg14[%c0_20, %c0_21, %c0_22], %51 {strides = array<i32>} : memref<3x8x128xf32, #tpu.memory_space<vmem>>, vector<1x8x128xf32>,
    %52 = arith.truncf %45 : vector<8x128xf32> to vector<8x128xbf16>
    %c1 = arith.constant 1 : index
    %c0_23 = arith.constant 0 : index
    %c0_24 = arith.constant 0 : index
    %53 = vector.load %arg2[%c1, %c0_23, %c0_24] : memref<3x8x128xf32, #tpu.memory_space<vmem>>, vector<1x8x128xf32>
    %54 = vector.shape_cast %53 : vector<1x8x128xf32> to vector<8x128xf32>
    %c1_25 = arith.constant 1 : index
    %c0_26 = arith.constant 0 : index
    %c0_27 = arith.constant 0 : index
    %55 = vector.load %arg3[%c1_25, %c0_26, %c0_27] : memref<3x8x128xf32, #tpu.memory_space<vmem>>, vector<1x8x128xf32>
    %56 = vector.shape_cast %55 : vector<1x8x128xf32> to vector<8x128xf32>
    %57 = arith.truncf %54 : vector<8x128xf32> to vector<8x128xbf16>
    %58 = tpu.concatenate %52, %57 in 1 : vector<8x128xbf16>, vector<8x128xbf16> -> vector<8x256xbf16>
    %c0_28 = arith.constant 0 : index
    %c0_29 = arith.constant 0 : index
    %59 = vector.load %arg6[%c0_28, %c0_29] : memref<256x512xbf16, #tpu.memory_space<vmem>>, vector<256x512xbf16>
    %cst_30 = arith.constant dense<0.000000e+00> : vector<8x512xf32>
    %60 = tpu.matmul %58, %59, %cst_30 {dimension_numbers = #tpu.dot_dimension_numbers<[1], [0], [0], [1], [0, 0, 1, 1], [], []>} : vector<8x256xbf16>, vector<256x512xbf16>, vector<8x512xf32> -> vector<8x512xf32>
    %c0_31 = arith.constant 0 : index
    %c0_32 = arith.constant 0 : index
    %61 = vector.load %arg7[%c0_31, %c0_32] : memref<1x512xf32, #tpu.memory_space<vmem>>, vector<1x512xf32>
    %62 = vector.broadcast %61 : vector<1x512xf32> to vector<8x512xf32>
    %63 = arith.addf %60, %62 : vector<8x512xf32>
    %64 = vector.extract_strided_slice %63 {offsets = [0, 0], sizes = [8, 128], strides = [1, 1]} : vector<8x512xf32> to vector<8x128xf32>
    %65 = arith.negf %64 : vector<8x128xf32>
    %66 = math.exp %65 : vector<8x128xf32>
    %cst_33 = arith.constant 1.000000e+00 : f32
    %67 = vector.broadcast %cst_33 : f32 to vector<8x128xf32>
    %68 = arith.addf %67, %66 : vector<8x128xf32>
    %69 = arith.divf %67, %68 : vector<8x128xf32>
    %70 = vector.extract_strided_slice %63 {offsets = [0, 128], sizes = [8, 128], strides = [1, 1]} : vector<8x512xf32> to vector<8x128xf32>
    %71 = arith.negf %70 : vector<8x128xf32>
    %72 = math.exp %71 : vector<8x128xf32>
    %cst_34 = arith.constant 1.000000e+00 : f32
    %73 = vector.broadcast %cst_34 : f32 to vector<8x128xf32>
    %74 = arith.addf %73, %72 : vector<8x128xf32>
    %75 = arith.divf %73, %74 : vector<8x128xf32>
    %76 = vector.extract_strided_slice %63 {offsets = [0, 256], sizes = [8, 128], strides = [1, 1]} : vector<8x512xf32> to vector<8x128xf32>
    %77 = math.tanh %76 : vector<8x128xf32>
    %78 = vector.extract_strided_slice %63 {offsets = [0, 384], sizes = [8, 128], strides = [1, 1]} : vector<8x512xf32> to vector<8x128xf32>
    %79 = arith.negf %78 : vector<8x128xf32>
    %80 = math.exp %79 : vector<8x128xf32>
    %cst_35 = arith.constant 1.000000e+00 : f32
    %81 = vector.broadcast %cst_35 : f32 to vector<8x128xf32>
    %82 = arith.addf %81, %80 : vector<8x128xf32>
    %83 = arith.divf %81, %82 : vector<8x128xf32>
    %84 = arith.mulf %75, %56 : vector<8x128xf32>
    %85 = arith.mulf %69, %77 : vector<8x128xf32>
    %86 = arith.addf %84, %85 : vector<8x128xf32>
    %87 = math.tanh %86 : vector<8x128xf32>
    %88 = arith.mulf %83, %87 : vector<8x128xf32>
    %c1_36 = arith.constant 1 : index
    %c0_37 = arith.constant 0 : index
    %c0_38 = arith.constant 0 : index
    %89 = vector.load %arg13[%c1_36, %c0_37, %c0_38] : memref<3x8x128xf32, #tpu.memory_space<vmem>>, vector<1x8x128xf32>
    %90 = vector.shape_cast %89 : vector<1x8x128xf32> to vector<8x128xf32>
    %91 = vector.shape_cast %88 : vector<8x128xf32> to vector<1x8x128xf32>
    tpu.vector_store %arg13[%c1_36, %c0_37, %c0_38], %91 {strides = array<i32>} : memref<3x8x128xf32, #tpu.memory_space<vmem>>, vector<1x8x128xf32>,
    %c1_39 = arith.constant 1 : index
    %c0_40 = arith.constant 0 : index
    %c0_41 = arith.constant 0 : index
    %92 = vector.load %arg14[%c1_39, %c0_40, %c0_41] : memref<3x8x128xf32, #tpu.memory_space<vmem>>, vector<1x8x128xf32>
    %93 = vector.shape_cast %92 : vector<1x8x128xf32> to vector<8x128xf32>
    %94 = vector.shape_cast %86 : vector<8x128xf32> to vector<1x8x128xf32>
    tpu.vector_store %arg14[%c1_39, %c0_40, %c0_41], %94 {strides = array<i32>} : memref<3x8x128xf32, #tpu.memory_space<vmem>>, vector<1x8x128xf32>,
    %95 = arith.truncf %88 : vector<8x128xf32> to vector<8x128xbf16>
    %c2 = arith.constant 2 : index
    %c0_42 = arith.constant 0 : index
    %c0_43 = arith.constant 0 : index
    %96 = vector.load %arg2[%c2, %c0_42, %c0_43] : memref<3x8x128xf32, #tpu.memory_space<vmem>>, vector<1x8x128xf32>
    %97 = vector.shape_cast %96 : vector<1x8x128xf32> to vector<8x128xf32>
    %c2_44 = arith.constant 2 : index
    %c0_45 = arith.constant 0 : index
    %c0_46 = arith.constant 0 : index
    %98 = vector.load %arg3[%c2_44, %c0_45, %c0_46] : memref<3x8x128xf32, #tpu.memory_space<vmem>>, vector<1x8x128xf32>
    %99 = vector.shape_cast %98 : vector<1x8x128xf32> to vector<8x128xf32>
    %100 = arith.truncf %97 : vector<8x128xf32> to vector<8x128xbf16>
    %101 = tpu.concatenate %95, %100 in 1 : vector<8x128xbf16>, vector<8x128xbf16> -> vector<8x256xbf16>
    %c0_47 = arith.constant 0 : index
    %c0_48 = arith.constant 0 : index
    %102 = vector.load %arg8[%c0_47, %c0_48] : memref<256x512xbf16, #tpu.memory_space<vmem>>, vector<256x512xbf16>
    %cst_49 = arith.constant dense<0.000000e+00> : vector<8x512xf32>
    %103 = tpu.matmul %101, %102, %cst_49 {dimension_numbers = #tpu.dot_dimension_numbers<[1], [0], [0], [1], [0, 0, 1, 1], [], []>} : vector<8x256xbf16>, vector<256x512xbf16>, vector<8x512xf32> -> vector<8x512xf32>
    %c0_50 = arith.constant 0 : index
    %c0_51 = arith.constant 0 : index
    %104 = vector.load %arg9[%c0_50, %c0_51] : memref<1x512xf32, #tpu.memory_space<vmem>>, vector<1x512xf32>
    %105 = vector.broadcast %104 : vector<1x512xf32> to vector<8x512xf32>
    %106 = arith.addf %103, %105 : vector<8x512xf32>
    %107 = vector.extract_strided_slice %106 {offsets = [0, 0], sizes = [8, 128], strides = [1, 1]} : vector<8x512xf32> to vector<8x128xf32>
    %108 = arith.negf %107 : vector<8x128xf32>
    %109 = math.exp %108 : vector<8x128xf32>
    %cst_52 = arith.constant 1.000000e+00 : f32
    %110 = vector.broadcast %cst_52 : f32 to vector<8x128xf32>
    %111 = arith.addf %110, %109 : vector<8x128xf32>
    %112 = arith.divf %110, %111 : vector<8x128xf32>
    %113 = vector.extract_strided_slice %106 {offsets = [0, 128], sizes = [8, 128], strides = [1, 1]} : vector<8x512xf32> to vector<8x128xf32>
    %114 = arith.negf %113 : vector<8x128xf32>
    %115 = math.exp %114 : vector<8x128xf32>
    %cst_53 = arith.constant 1.000000e+00 : f32
    %116 = vector.broadcast %cst_53 : f32 to vector<8x128xf32>
    %117 = arith.addf %116, %115 : vector<8x128xf32>
    %118 = arith.divf %116, %117 : vector<8x128xf32>
    %119 = vector.extract_strided_slice %106 {offsets = [0, 256], sizes = [8, 128], strides = [1, 1]} : vector<8x512xf32> to vector<8x128xf32>
    %120 = math.tanh %119 : vector<8x128xf32>
    %121 = vector.extract_strided_slice %106 {offsets = [0, 384], sizes = [8, 128], strides = [1, 1]} : vector<8x512xf32> to vector<8x128xf32>
    %122 = arith.negf %121 : vector<8x128xf32>
    %123 = math.exp %122 : vector<8x128xf32>
    %cst_54 = arith.constant 1.000000e+00 : f32
    %124 = vector.broadcast %cst_54 : f32 to vector<8x128xf32>
    %125 = arith.addf %124, %123 : vector<8x128xf32>
    %126 = arith.divf %124, %125 : vector<8x128xf32>
    %127 = arith.mulf %118, %99 : vector<8x128xf32>
    %128 = arith.mulf %112, %120 : vector<8x128xf32>
    %129 = arith.addf %127, %128 : vector<8x128xf32>
    %130 = math.tanh %129 : vector<8x128xf32>
    %131 = arith.mulf %126, %130 : vector<8x128xf32>
    %c2_55 = arith.constant 2 : index
    %c0_56 = arith.constant 0 : index
    %c0_57 = arith.constant 0 : index
    %132 = vector.load %arg13[%c2_55, %c0_56, %c0_57] : memref<3x8x128xf32, #tpu.memory_space<vmem>>, vector<1x8x128xf32>
    %133 = vector.shape_cast %132 : vector<1x8x128xf32> to vector<8x128xf32>
    %134 = vector.shape_cast %131 : vector<8x128xf32> to vector<1x8x128xf32>
    tpu.vector_store %arg13[%c2_55, %c0_56, %c0_57], %134 {strides = array<i32>} : memref<3x8x128xf32, #tpu.memory_space<vmem>>, vector<1x8x128xf32>,
    %c2_58 = arith.constant 2 : index
    %c0_59 = arith.constant 0 : index
    %c0_60 = arith.constant 0 : index
    %135 = vector.load %arg14[%c2_58, %c0_59, %c0_60] : memref<3x8x128xf32, #tpu.memory_space<vmem>>, vector<1x8x128xf32>
    %136 = vector.shape_cast %135 : vector<1x8x128xf32> to vector<8x128xf32>
    %137 = vector.shape_cast %129 : vector<8x128xf32> to vector<1x8x128xf32>
    tpu.vector_store %arg14[%c2_58, %c0_59, %c0_60], %137 {strides = array<i32>} : memref<3x8x128xf32, #tpu.memory_space<vmem>>, vector<1x8x128xf32>,
    %138 = arith.truncf %131 : vector<8x128xf32> to vector<8x128xbf16>
    %c0_61 = arith.constant 0 : index
    %c0_62 = arith.constant 0 : index
    %139 = vector.load %arg10[%c0_61, %c0_62] : memref<128x128xbf16, #tpu.memory_space<vmem>>, vector<128x128xbf16>
    %cst_63 = arith.constant dense<0.000000e+00> : vector<8x128xf32>
    %140 = tpu.matmul %138, %139, %cst_63 {dimension_numbers = #tpu.dot_dimension_numbers<[1], [0], [0], [1], [0, 0, 1, 1], [], []>} : vector<8x128xbf16>, vector<128x128xbf16>, vector<8x128xf32> -> vector<8x128xf32>
    %c0_64 = arith.constant 0 : index
    %c0_65 = arith.constant 0 : index
    %141 = vector.load %arg11[%c0_64, %c0_65] : memref<1x128xf32, #tpu.memory_space<vmem>>, vector<1x128xf32>
    %142 = vector.broadcast %141 : vector<1x128xf32> to vector<8x128xf32>
    %143 = arith.addf %140, %142 : vector<8x128xf32>
    %c0_66 = arith.constant 0 : index
    %c0_67 = arith.constant 0 : index
    %144 = vector.load %arg12[%c0_66, %c0_67] : memref<8x128xf32, #tpu.memory_space<vmem>>, vector<8x128xf32>
    tpu.vector_store %arg12[%c0_66, %c0_67], %143 {strides = array<i32>} : memref<8x128xf32, #tpu.memory_space<vmem>>, vector<8x128xf32>,
    return
  }
}

</mosaic_0001>

<bundles_post_ra>
// kernel: tpu_custom_call.1
= control target key start
LH: loop header
LB: loop body
LE: loop exit
PB: predicated region body
PF: predicated region fallthrough
CT: control target
= control target key end

     0   :  { %20 = vsyncpa [#allocation3], 0  ;;  %s3750_s0 = inlined_call_operand.vmem [shape: s32[8,1], index: 0, kind: input, shape index: {}]   ;;  %s3751_s1 = inlined_call_operand.vmem [shape: bf16[128,128], index: 1, kind: input, shape index: {}]   ;;  %s3752_s2 = inlined_call_operand.hbm [shape: f32[3,8,128], index: 2, kind: input, shape index: {}, may-alias: {2,13}]   ;;  %s3753_s3 = inlined_call_operand.hbm [shape: f32[3,8,128], index: 3, kind: input, shape index: {}, may-alias: {3,14}]   ;;  %s3754_s4 = inlined_call_operand.hbm [shape: bf16[256,512], index: 4, kind: input, shape index: {}]   ;;  %s3755_s5 = inlined_call_operand.vmem [shape: f32[1,512], index: 5, kind: input, shape index: {}]   ;;  %s3756_s6 = inlined_call_operand.hbm [shape: bf16[256,512], index: 6, kind: input, shape index: {}]   ;;  %s3757_s7 = inlined_call_operand.vmem [shape: f32[1,512], index: 7, kind: input, shape index: {}]   ;;  %s3758_s8 = inlined_call_operand.hbm [shape: bf16[256,512], index: 8, kind: input, shape index: {}]   ;;  %s3759_s9 = inlined_call_operand.vmem [shape: f32[1,512], index: 9, kind: input, shape index: {}]   ;;  %s3760_s10 = inlined_call_operand.hbm [shape: bf16[128,128], index: 10, kind: input, shape index: {}]   ;;  %s3761_s11 = inlined_call_operand.vmem [shape: f32[1,128], index: 11, kind: input, shape index: {}]   ;;  %s3762_s12 = inlined_call_operand.hbm [shape: f32[8,128], index: 12, kind: output, shape index: {0}]   ;;  %s3763_s13 = inlined_call_operand.hbm [shape: f32[3,8,128], index: 13, kind: output, shape index: {1}, may-alias: {2,13}]   ;;  %s3764_s14 = inlined_call_operand.hbm [shape: f32[3,8,128], index: 14, kind: output, shape index: {2}, may-alias: {3,14}]  }
   0x1   :  { %21 = vsyncpa [#allocation6], 0 }
   0x2   :  { %22 = vsyncpa [#allocation9], 0 }
   0x3   :  { %23 = vsyncpa [#allocation12], 0 }
   0x4   :  { %24 = vsyncpa [#allocation4], 0 }
   0x5   :  { %25 = vsyncpa [#allocation15], 0  ;;  %s47_s15 = sshll.u32 %s3753_s3, 4  ;;  %s3421_s16 = smov [#allocation5]   ;;  %s48_s15 = int_to_ptr.hbm [resolvable:$true] %s47_s15 }
   0x6   :  { %s49_s17 = sshll.u32 %s3421_s16, 4  ;;  %s3422_s18 = smov 128   ;;  %s50_s17 = int_to_ptr.vmem [resolvable:$true] %s49_s17 }
   0x7   :  { %s3423_s19 = smov 8   ;;  %s75_s22 = sshll.u32 %s3756_s6, 4  ;;  %s76_s22 = int_to_ptr.hbm [resolvable:$true] %s75_s22 }
   0x8   :  { %55 = dma.hbm_to_vmem [thread:$0]  %s48_s15, 384, %s50_s17, [#allocation6], %s3422_s18, %s3422_s18, %s3423_s19  }
   0x9   :  { %s3424_s23 = smov [#allocation8]   ;;  %s34_s3 = sshll.u32 %s3752_s2, 4  ;;  %s35_s3 = int_to_ptr.hbm [resolvable:$true] %s34_s3 }
   0xa   :  { %s77_s24 = sshll.u32 %s3424_s23, 4  ;;  %s3425_s27 = smov 256   ;;  %s78_s24 = int_to_ptr.vmem [resolvable:$true] %s77_s24 }
   0xb   :  { %s3426_s28 = smov 16   ;;  %s60_s15 = sshll.u32 %s3754_s4, 4  ;;  %s61_s15 = int_to_ptr.hbm [resolvable:$true] %s60_s15 }
   0xc   :  { %83 = dma.hbm_to_vmem [thread:$0]  %s76_s22, 8192, %s78_s24, [#allocation9], %s3425_s27, %s3425_s27, %s3426_s28  }
   0xd   :  { %s3427_s16 = smov [#allocation2]   ;;  %s3428_s6 = smov [#allocation7]  }
   0xe   :  { %s36_s17 = sshll.u32 %s3427_s16, 4  ;;  %s62_s20 = sshll.u32 %s3428_s6, 4  ;;  %s37_s17 = int_to_ptr.vmem [resolvable:$true] %s36_s17  ;;  %s63_s20 = int_to_ptr.vmem [resolvable:$true] %s62_s20 }
   0xf   :  { %42 = dma.hbm_to_vmem [thread:$0]  %s35_s3, 384, %s37_s17, [#allocation3], %s3422_s18, %s3422_s18, %s3423_s19  }
  0x10   :  { %s90_s23 = sshll.u32 %s3758_s8, 4  ;;  %s105_s4 = sshll.u32 %s3760_s10, 4  ;;  %s91_s23 = int_to_ptr.hbm [resolvable:$true] %s90_s23  ;;  %s106_s4 = int_to_ptr.hbm [resolvable:$true] %s105_s4 }
  0x11   :  { %68 = dma.hbm_to_vmem [thread:$0]  %s61_s15, 8192, %s63_s20, [#allocation6], %s3425_s27, %s3425_s27, %s3426_s28  }
  0x12   :  { %s3429_s25 = smov [#allocation10]   ;;  %s3430_s29 = smov [#allocation11]  }
  0x13   :  { %s92_s26 = sshll.u32 %s3429_s25, 4  ;;  %s107_s3 = sshll.u32 %s3430_s29, 4  ;;  %s93_s26 = int_to_ptr.vmem [resolvable:$true] %s92_s26  ;;  %s108_s3 = int_to_ptr.vmem [resolvable:$true] %s107_s3 }
  0x14   :  { %98 = dma.hbm_to_vmem [thread:$0]  %s91_s23, 8192, %s93_s26, [#allocation9], %s3425_s27, %s3425_s27, %s3426_s28  }
  0x15   :  { %s3431_s30 = smov 64   ;;  %s3432_s16 = smov 4  }
  0x16   :  { %113 = dma.hbm_to_vmem [thread:$0]  %s106_s4, 1024, %s108_s3, [#allocation12], %s3431_s30, %s3431_s30, %s3432_s16  }
  0x17   :  { %3409 = dma.done.wait [#allocation3], 384  }
  0x18   :  { %3410 = vsyncadd [#allocation3], 4294966912 }
  0x19   :  { %3411 = dma.done.wait [#allocation6], 8576  }
  0x1a   :  { %3412 = vsyncadd [#allocation6], 4294958720 }
  0x1b   :  { %3413 = dma.done.wait [#allocation9], 16384  }
  0x1c   :  { %3414 = vsyncadd [#allocation9], 4294950912 }
  0x1d   :  { %3415 = dma.done.wait [#allocation12], 1024  }
  0x1e   :  { %3416 = vsyncadd [#allocation12], 4294966272  ;;  %v3433_v0 = vmov 0   ;;  %v140_v1 = vld [vmem:[%s3750_s0] sm:$0xff]  ;;  %v2925_v2 = vld [vmem:[%s3751_s1 + $0x38] sm:$0xff]  ;;  %s2036_s10 = sshll.u32 %s3763_s13, 4  ;;  %s2037_s10 = int_to_ptr.hbm [resolvable:$true] %s2036_s10 }
  0x1f   :  { %3143 = vset.pattern.permute.xlu0 %v3433_v0  ;;  %214 = vmatpush.bf16.msra.mxu0 %v2925_v2  ;;  %v2924_v3 = vld [vmem:[%s3751_s1 + $0x30] sm:$0xff]  ;;  %v2923_v4 = vld [vmem:[%s3751_s1 + $0x28] sm:$0xff]  ;;  %v2922_v5 = vld [vmem:[%s3751_s1 + $0x20] sm:$0xff]  ;;  %s3435_s27 = smov [#allocation14]   ;;  %s3436_s15 = smov [#allocation16]  }
  0x20   :  { %144 = vperm.xlu0 %3143, %v140_v1   ;;  %v2921_v6 = vld [vmem:[%s3751_s1 + $0x18] sm:$0xff]  ;;  %v2920_v7 = vld [vmem:[%s3751_s1 + $0x10] sm:$0xff]  ;;  %v2919_v8 = vld [vmem:[%s3751_s1 + $0x8] sm:$0xff]  ;;  %s2034_s28 = sshll.u32 %s3435_s27, 4  ;;  %s2047_s17 = sshll.u32 %s3436_s15, 4  ;;  %s2035_s28 = int_to_ptr.vmem [resolvable:$true] %s2034_s28  ;;  %s2048_s17 = int_to_ptr.vmem [resolvable:$true] %s2047_s17 }
  0x21   :  { %v2918_v9 = vld [vmem:[%s3751_s1] sm:$0xff]  ;;  %v2351_v10 = vld [vmem:[#allocation7 + $0x1e0] sm:$0xf]  ;;  %v2954_v18 = vld [vmem:[#allocation7 + $0xe4] sm:$0xf]  ;;  %s2049_s2 = sshll.u32 %s3764_s14, 4  ;;  %s2050_s2 = int_to_ptr.hbm [resolvable:$true] %s2049_s2 }
  0x22   :  { %v2988_v11 = vld [vmem:[#allocation7 + $0x1ec] sm:$0xf0]  ;;  %v2223_v12 = vld [vmem:[#allocation7 + $0xe0] sm:$0xf]  ;;  %v2225_v19 = vld [vmem:[#allocation7 + $0xf0] sm:$0xf0] }
  0x23   :  { %215 = vmatpush.bf16.msra.mxu0 %v2924_v3  ;;  %v2352_v13 = vor.u32 %v2988_v11, %v2351_v10  ;;  %v2956_v14 = vld [vmem:[#allocation7 + $0xec] sm:$0xf0]  ;;  %v2335_v15 = vld [vmem:[#allocation7 + $0x1c0] sm:$0xf]  ;;  %v2986_v20 = vld [vmem:[#allocation7 + $0x1e4] sm:$0xf]  ;;  %v2228_v22 = vor.u32 %v2954_v18, %v2225_v19 }
  0x24   :  { %v2984_v16 = vld [vmem:[#allocation7 + $0x1cc] sm:$0xf0]  ;;  %v2224_v17 = vor.u32 %v2956_v14, %v2223_v12  ;;  %v2353_v23 = vld [vmem:[#allocation7 + $0x1f0] sm:$0xf0]  ;;  %v2207_v24 = vld [vmem:[#allocation7 + $0xc0] sm:$0xf] }
  0x25   :  { %638 = vmatpush.bf16.msra.mxu2 %v2352_v13  ;;  %v2336_v21 = vor.u32 %v2984_v16, %v2335_v15  ;;  %v2952_v25 = vld [vmem:[#allocation7 + $0xcc] sm:$0xf0]  ;;  %v2356_v26 = vor.u32 %v2986_v20, %v2353_v23  ;;  %v2319_v28 = vld [vmem:[#allocation7 + $0x1a0] sm:$0xf]  ;;  %v2950_v30 = vld [vmem:[#allocation7 + $0xc4] sm:$0xf]  ;;  %651 = vmatpush.bf16.msra.mxu3 %v2228_v22 }
  0x26   :  { %625 = vmatpush.bf16.msra.mxu1 %v2224_v17  ;;  %v2208_v27 = vor.u32 %v2952_v25, %v2207_v24  ;;  %v2980_v29 = vld [vmem:[#allocation7 + $0x1ac] sm:$0xf0]  ;;  %v2209_v31 = vld [vmem:[#allocation7 + $0xd0] sm:$0xf0]  ;;  %v2982_v32 = vld [vmem:[#allocation7 + $0x1c4] sm:$0xf] }
  0x27   :  { %216 = vmatpush.bf16.msra.mxu0 %v2923_v4  ;;  %v2337_v33 = vld [vmem:[#allocation7 + $0x1d0] sm:$0xf0]  ;;  %v2212_v34 = vor.u32 %v2950_v30, %v2209_v31  ;;  %v2191_v36 = vld [vmem:[#allocation7 + $0xa0] sm:$0xf]  ;;  %v2948_v37 = vld [vmem:[#allocation7 + $0xac] sm:$0xf0]  ;;  %v2320_v38 = vor.u32 %v2980_v29, %v2319_v28 }
  0x28   :  { %v2340_v35 = vor.u32 %v2982_v32, %v2337_v33  ;;  %v2303_v39 = vld [vmem:[#allocation7 + $0x180] sm:$0xf]  ;;  %v2946_v40 = vld [vmem:[#allocation7 + $0xa4] sm:$0xf]  ;;  %v2193_v41 = vld [vmem:[#allocation7 + $0xb0] sm:$0xf0]  ;;  %v2192_v42 = vor.u32 %v2948_v37, %v2191_v36 }
  0x29   :  { %639 = vmatpush.bf16.msra.mxu2 %v2336_v21  ;;  %v2976_v43 = vld [vmem:[#allocation7 + $0x18c] sm:$0xf0]  ;;  %v2978_v44 = vld [vmem:[#allocation7 + $0x1a4] sm:$0xf]  ;;  %v2321_v45 = vld [vmem:[#allocation7 + $0x1b0] sm:$0xf0]  ;;  %652 = vmatpush.bf16.msra.mxu3 %v2212_v34  ;;  %v2196_v46 = vor.u32 %v2946_v40, %v2193_v41 }
  0x2a   :  { %626 = vmatpush.bf16.msra.mxu1 %v2208_v27  ;;  %v2175_v47 = vld [vmem:[#allocation7 + $0x80] sm:$0xf]  ;;  %v2944_v48 = vld [vmem:[#allocation7 + $0x8c] sm:$0xf0]  ;;  %v2324_v49 = vor.u32 %v2978_v44, %v2321_v45  ;;  %v2942_v50 = vld [vmem:[#allocation7 + $0x84] sm:$0xf]  ;;  %v2304_v52 = vor.u32 %v2976_v43, %v2303_v39 }
  0x2b   :  { %217 = vmatpush.bf16.msra.mxu0 %v2922_v5  ;;  %v2177_v51 = vld [vmem:[#allocation7 + $0x90] sm:$0xf0]  ;;  %v2974_v53 = vld [vmem:[#allocation7 + $0x184] sm:$0xf]  ;;  %v2176_v55 = vor.u32 %v2944_v48, %v2175_v47  ;;  %v2287_v56 = vld [vmem:[#allocation7 + $0x160] sm:$0xf] }
  0x2c   :  { %v2305_v54 = vld [vmem:[#allocation7 + $0x190] sm:$0xf0]  ;;  %v2972_v57 = vld [vmem:[#allocation7 + $0x16c] sm:$0xf0]  ;;  %v2180_v58 = vor.u32 %v2942_v50, %v2177_v51  ;;  %v2159_v59 = vld [vmem:[#allocation7 + $0x60] sm:$0xf] }
  0x2d   :  { %640 = vmatpush.bf16.msra.mxu2 %v2320_v38  ;;  %653 = vmatpush.bf16.msra.mxu3 %v2196_v46  ;;  %v2940_v60 = vld [vmem:[#allocation7 + $0x6c] sm:$0xf0]  ;;  %v2308_v61 = vor.u32 %v2974_v53, %v2305_v54  ;;  %v2938_v62 = vld [vmem:[#allocation7 + $0x64] sm:$0xf]  ;;  %v2161_v63 = vld [vmem:[#allocation7 + $0x70] sm:$0xf0]  ;;  %v2288_v0 = vor.u32 %v2972_v57, %v2287_v56 }
  0x2e   :  { %627 = vmatpush.bf16.msra.mxu1 %v2192_v42  ;;  %v2970_v1 = vld [vmem:[#allocation7 + $0x164] sm:$0xf]  ;;  %v2289_v2 = vld [vmem:[#allocation7 + $0x170] sm:$0xf0]  ;;  %v2160_v3 = vor.u32 %v2940_v60, %v2159_v59  ;;  %v2271_v4 = vld [vmem:[#allocation7 + $0x140] sm:$0xf] }
  0x2f   :  { %218 = vmatpush.bf16.msra.mxu0 %v2921_v6  ;;  %v2968_v5 = vld [vmem:[#allocation7 + $0x14c] sm:$0xf0]  ;;  %v2164_v6 = vor.u32 %v2938_v62, %v2161_v63  ;;  %v2292_v10 = vor.u32 %v2970_v1, %v2289_v2  ;;  %v2934_v11 = vld [vmem:[#allocation7 + $0x44] sm:$0xf]  ;;  %v2145_v12 = vld [vmem:[#allocation7 + $0x50] sm:$0xf0] }
  0x30   :  { %v2272_v13 = vor.u32 %v2968_v5, %v2271_v4  ;;  %v2966_v14 = vld [vmem:[#allocation7 + $0x144] sm:$0xf]  ;;  %v2273_v15 = vld [vmem:[#allocation7 + $0x150] sm:$0xf0]  ;;  %v2255_v17 = vld [vmem:[#allocation7 + $0x120] sm:$0xf]  ;;  %v2148_v19 = vor.u32 %v2934_v11, %v2145_v12 }
  0x31   :  { %641 = vmatpush.bf16.msra.mxu2 %v2304_v52  ;;  %654 = vmatpush.bf16.msra.mxu3 %v2180_v58  ;;  %v2964_v18 = vld [vmem:[#allocation7 + $0x12c] sm:$0xf0]  ;;  %v2127_v20 = vld [vmem:[#allocation7 + $0x20] sm:$0xf]  ;;  %v2276_v23 = vor.u32 %v2966_v14, %v2273_v15  ;;  %v2930_v24 = vld [vmem:[#allocation7 + $0x24] sm:$0xf] }
  0x32   :  { %628 = vmatpush.bf16.msra.mxu1 %v2176_v55  ;;  %v2932_v21 = vld [vmem:[#allocation7 + $0x2c] sm:$0xf0]  ;;  %v2129_v25 = vld [vmem:[#allocation7 + $0x30] sm:$0xf0]  ;;  %v2239_v27 = vld [vmem:[#allocation7 + $0x100] sm:$0xf] }
  0x33   :  { %219 = vmatpush.bf16.msra.mxu0 %v2920_v7  ;;  %v2143_v7 = vld [vmem:[#allocation7 + $0x40] sm:$0xf]  ;;  %v2962_v28 = vld [vmem:[#allocation7 + $0x124] sm:$0xf]  ;;  %v2257_v29 = vld [vmem:[#allocation7 + $0x130] sm:$0xf0]  ;;  %v2128_v30 = vor.u32 %v2932_v21, %v2127_v20  ;;  %v2132_v34 = vor.u32 %v2930_v24, %v2129_v25 }
  0x34   :  { %v2960_v31 = vld [vmem:[#allocation7 + $0x10c] sm:$0xf0]  ;;  %v2359_v32 = vld [vmem:[#allocation7 + $0x1e8] sm:$0xf]  ;;  %v2989_v33 = vld [vmem:[#allocation7 + $0x1f4] sm:$0xf0]  ;;  %v2260_v38 = vor.u32 %v2962_v28, %v2257_v29 }
  0x35   :  { %642 = vmatpush.bf16.msra.mxu2 %v2288_v0  ;;  %655 = vmatpush.bf16.msra.mxu3 %v2164_v6  ;;  %v2928_v36 = vld [vmem:[#allocation7 + $0xc] sm:$0xf0]  ;;  %v2926_v37 = vld [vmem:[#allocation7 + $0x4] sm:$0xf]  ;;  %v2113_v39 = vld [vmem:[#allocation7 + $0x10] sm:$0xf0]  ;;  %v2240_v42 = vor.u32 %v2960_v31, %v2239_v27  ;;  %v2360_v46 = vor.u32 %v2989_v33, %v2359_v32 }
  0x36   :  { %629 = vmatpush.bf16.msra.mxu1 %v2160_v3  ;;  %v2958_v40 = vld [vmem:[#allocation7 + $0x104] sm:$0xf]  ;;  %v2241_v41 = vld [vmem:[#allocation7 + $0x110] sm:$0xf0]  ;;  %v2231_v43 = vld [vmem:[#allocation7 + $0xe8] sm:$0xf]  ;;  %v2116_v52 = vor.u32 %v2926_v37, %v2113_v39 }
  0x37   :  { %220 = vmatpush.bf16.msra.mxu0 %v2919_v8  ;;  %v2936_v8 = vld [vmem:[#allocation7 + $0x4c] sm:$0xf0]  ;;  %v2957_v44 = vld [vmem:[#allocation7 + $0xf4] sm:$0xf0]  ;;  %v2955_v45 = vld [vmem:[#allocation7 + $0xec] sm:$0xf]  ;;  %v2244_v55 = vor.u32 %v2958_v40, %v2241_v41 }
  0x38   :  { %v2144_v16 = vor.u32 %v2936_v8, %v2143_v7  ;;  %v2233_v47 = vld [vmem:[#allocation7 + $0xf8] sm:$0xf0]  ;;  %v2987_v48 = vld [vmem:[#allocation7 + $0x1ec] sm:$0xf]  ;;  %v2343_v53 = vld [vmem:[#allocation7 + $0x1c8] sm:$0xf]  ;;  %v2232_v56 = vor.u32 %v2957_v44, %v2231_v43 }
  0x39   :  { %643 = vmatpush.bf16.msra.mxu2 %v2272_v13  ;;  %656 = vmatpush.bf16.msra.mxu3 %v2148_v19  ;;  %v2985_v54 = vld [vmem:[#allocation7 + $0x1d4] sm:$0xf0]  ;;  %v2215_v57 = vld [vmem:[#allocation7 + $0xc8] sm:$0xf]  ;;  %v228_v58 = vld [vmem:[#allocation2] sm:$0xff]  ;;  %v2236_v59 = vor.u32 %v2955_v45, %v2233_v47  ;;  %s3437_s0 = smov [#allocation13]  }
  0x3a   :  { %630 = vmatpush.bf16.msra.mxu1 %v2144_v16  ;;  %v2951_v62 = vld [vmem:[#allocation7 + $0xcc] sm:$0xf]  ;;  %v3434_v63 = vmov 1.0|1.0   ;;  %v2344_v0 = vor.u32 %v2985_v54, %v2343_v53  ;;  %v2217_v1 = vld [vmem:[#allocation7 + $0xd8] sm:$0xf0]  ;;  %v3564_v6 = vpack.c.bf16 %v228_v58, %v228_v58 }
  0x3b   :  { %221 = vmatpush.bf16.msra.mxu0 %v2918_v9  ;;  %v141_v9 = vlaneseq  ;;  %v2983_v2 = vld [vmem:[#allocation7 + $0x1cc] sm:$0xf]  ;;  %v2345_v3 = vld [vmem:[#allocation7 + $0x1d8] sm:$0xf0]  ;;  %v2327_v4 = vld [vmem:[#allocation7 + $0x1a8] sm:$0xf]  ;;  %v2220_v8 = vor.u32 %v2951_v62, %v2217_v1 }
  0x3c   :  { %v2981_v5 = vld [vmem:[#allocation7 + $0x1b4] sm:$0xf0]  ;;  %v2947_v12 = vld [vmem:[#allocation7 + $0xac] sm:$0xf]  ;;  %v2201_v14 = vld [vmem:[#allocation7 + $0xb8] sm:$0xf0] }
  0x3d   :  { %v142_v22 = vand.u32 127, %v141_v9  ;;  %657 = vmatpush.bf16.msra.mxu3 %v2132_v34  ;;  %v2348_v9 = vor.u32 %v2983_v2, %v2345_v3  ;;  %v2949_v11 = vld [vmem:[#allocation7 + $0xb4] sm:$0xf0]  ;;  %v2328_v13 = vor.u32 %v2981_v5, %v2327_v4  ;;  %v2979_v15 = vld [vmem:[#allocation7 + $0x1ac] sm:$0xf]  ;;  %v2204_v20 = vor.u32 %v2947_v12, %v2201_v14  ;;  %s2024_s23 = sshll.u32 %s3437_s0, 4  ;;  %s2025_s23 = int_to_ptr.vmem [resolvable:$true] %s2024_s23 }
  0x3e   :  { %631 = vmatpush.bf16.msra.mxu1 %v2128_v30  ;;  %v2329_v16 = vld [vmem:[#allocation7 + $0x1b8] sm:$0xf0]  ;;  %v2945_v24 = vld [vmem:[#allocation7 + $0x94] sm:$0xf0]  ;;  %v2295_v25 = vld [vmem:[#allocation7 + $0x168] sm:$0xf] }
  0x3f   :  { %664 = vmatpush.bf16.msrb.mxu0 %v2356_v26  ;;  %v2256_v26 = vor.u32 %v2964_v18, %v2255_v17  ;;  %v2311_v17 = vld [vmem:[#allocation7 + $0x188] sm:$0xf]  ;;  %v2977_v18 = vld [vmem:[#allocation7 + $0x194] sm:$0xf0]  ;;  %v2332_v21 = vor.u32 %v2979_v15, %v2329_v16  ;;  %v2943_v28 = vld [vmem:[#allocation7 + $0x8c] sm:$0xf] }
  0x40   :  { %v2973_v27 = vld [vmem:[#allocation7 + $0x174] sm:$0xf0]  ;;  %v2185_v29 = vld [vmem:[#allocation7 + $0x98] sm:$0xf0]  ;;  %v2975_v32 = vld [vmem:[#allocation7 + $0x18c] sm:$0xf] }
  0x41   :  { %644 = vmatpush.bf16.msra.mxu2 %v2256_v26  ;;  %658 = vmatpush.bf16.msra.mxu3 %v2116_v52  ;;  %v2296_v30 = vor.u32 %v2973_v27, %v2295_v25  ;;  %v2188_v31 = vor.u32 %v2943_v28, %v2185_v29  ;;  %v2313_v33 = vld [vmem:[#allocation7 + $0x198] sm:$0xf0]  ;;  %v2279_v37 = vld [vmem:[#allocation7 + $0x148] sm:$0xf]  ;;  %v2969_v39 = vld [vmem:[#allocation7 + $0x154] sm:$0xf0] }
  0x42   :  { %v2316_v34 = vor.u32 %v2975_v32, %v2313_v33  ;;  %v2939_v40 = vld [vmem:[#allocation7 + $0x6c] sm:$0xf]  ;;  %v2169_v41 = vld [vmem:[#allocation7 + $0x78] sm:$0xf0]  ;;  %v2151_v47 = vld [vmem:[#allocation7 + $0x48] sm:$0xf] }
  0x43   :  { %665 = vmatpush.bf16.msrb.mxu0 %v2340_v35  ;;  %v2111_v35 = vld [vmem:[#allocation7] sm:$0xf]  ;;  %v2172_v43 = vor.u32 %v2939_v40, %v2169_v41  ;;  %v2971_v44 = vld [vmem:[#allocation7 + $0x16c] sm:$0xf]  ;;  %v2297_v45 = vld [vmem:[#allocation7 + $0x178] sm:$0xf0] }
  0x44   :  { %v2112_v51 = vor.u32 %v2928_v36, %v2111_v35  ;;  %v2167_v35 = vld [vmem:[#allocation7 + $0x68] sm:$0xf]  ;;  %v2941_v36 = vld [vmem:[#allocation7 + $0x74] sm:$0xf0]  ;;  %v2935_v52 = vld [vmem:[#allocation7 + $0x4c] sm:$0xf] }
  0x45   :  { %645 = vmatpush.bf16.msra.mxu2 %v2240_v42  ;;  %703 = vmatpush.bf16.msrb.mxu3 %v2236_v59  ;;  %v2280_v42 = vor.u32 %v2969_v39, %v2279_v37  ;;  %v2153_v53 = vld [vmem:[#allocation7 + $0x58] sm:$0xf0]  ;;  %v2135_v59 = vld [vmem:[#allocation7 + $0x28] sm:$0xf]  ;;  %v2963_v4 = vld [vmem:[#allocation7 + $0x12c] sm:$0xf] }
  0x46   :  { %632 = vmatpush.bf16.msra.mxu1 %v2112_v51  ;;  %v2965_v51 = vld [vmem:[#allocation7 + $0x134] sm:$0xf0]  ;;  %v2137_v1 = vld [vmem:[#allocation7 + $0x38] sm:$0xf0]  ;;  %v2482_v27 = vld [vmem:[#allocation8 + $0xe0] sm:$0xf] }
  0x47   :  { %666 = vmatpush.bf16.msrb.mxu0 %v2324_v49  ;;  %v2361_v49 = vld [vmem:[#allocation7 + $0x1f8] sm:$0xf0]  ;;  %v3020_v28 = vld [vmem:[#allocation8 + $0xec] sm:$0xf0]  ;;  %v2484_v32 = vld [vmem:[#allocation8 + $0xf0] sm:$0xf0] }
  0x48   :  { %v2364_v60 = vor.u32 %v2987_v48, %v2361_v49  ;;  %646 = vmatmul.bf16.vlgmr.msra.gmra.mxu2 %v3564_v6  ;;  %v2937_v48 = vld [vmem:[#allocation7 + $0x54] sm:$0xf0]  ;;  %v2263_v49 = vld [vmem:[#allocation7 + $0x128] sm:$0xf]  ;;  %v2265_v5 = vld [vmem:[#allocation7 + $0x138] sm:$0xf0]  ;;  %v2483_v29 = vor.u32 %v3020_v28, %v2482_v27 }
  0x49   :  { %690 = vmatpush.bf16.msrb.mxu2 %v2360_v46  ;;  %704 = vmatpush.bf16.msrb.mxu3 %v2220_v8  ;;  %v2300_v46 = vor.u32 %v2971_v44, %v2297_v45  ;;  %v2264_v54 = vor.u32 %v2965_v51, %v2263_v49  ;;  %v2268_v8 = vor.u32 %v2963_v4, %v2265_v5  ;;  %v2249_v14 = vld [vmem:[#allocation7 + $0x118] sm:$0xf0]  ;;  %v3016_v39 = vld [vmem:[#allocation8 + $0xcc] sm:$0xf0]  ;;  %v2578_v40 = vld [vmem:[#allocation8 + $0x1a0] sm:$0xf] }
  0x4a   :  { %677 = vmatpush.bf16.msrb.mxu1 %v2232_v56  ;;  %v2967_v56 = vld [vmem:[#allocation7 + $0x14c] sm:$0xf]  ;;  %v2468_v44 = vld [vmem:[#allocation8 + $0xd0] sm:$0xf0]  ;;  %v3036_v5 = vld [vmem:[#allocation8 + $0x16c] sm:$0xf0] }
  0x4b   :  { %667 = vmatpush.bf16.msrb.mxu0 %v2308_v61  ;;  %v2953_v61 = vld [vmem:[#allocation7 + $0xd4] sm:$0xf0]  ;;  %v2596_v49 = vld [vmem:[#allocation8 + $0x1d0] sm:$0xf0]  ;;  %v3034_v28 = vld [vmem:[#allocation8 + $0x164] sm:$0xf] }
  0x4c   :  { %v2216_v7 = vor.u32 %v2953_v61, %v2215_v57  ;;  %v2281_v57 = vld [vmem:[#allocation7 + $0x158] sm:$0xf0]  ;;  %v2247_v61 = vld [vmem:[#allocation7 + $0x108] sm:$0xf]  ;;  %s2026_s4 = sshll.u32 %s3762_s12, 4  ;;  %s2027_s4 = int_to_ptr.hbm [resolvable:$true] %s2026_s4 }
  0x4d   :  { %691 = vmatpush.bf16.msrb.mxu2 %v2344_v0  ;;  %705 = vmatpush.bf16.msrb.mxu3 %v2204_v20  ;;  %v2284_v58 = vor.u32 %v2967_v56, %v2281_v57  ;;  %v2931_v0 = vld [vmem:[#allocation7 + $0x2c] sm:$0xf]  ;;  %v3040_v56 = vld [vmem:[#allocation8 + $0x18c] sm:$0xf0]  ;;  %v3010_v57 = vld [vmem:[#allocation8 + $0xa4] sm:$0xf] }
  0x4e   :  { %678 = vmatpush.bf16.msrb.mxu1 %v2216_v7  ;;  %v2140_v3 = vor.u32 %v2931_v0, %v2137_v1  ;;  %v2119_v7 = vld [vmem:[#allocation7 + $0x8] sm:$0xf]  ;;  %v2434_v1 = vld [vmem:[#allocation8 + $0x80] sm:$0xf] }
  0x4f   :  { %668 = vmatpush.bf16.msrb.mxu0 %v2292_v10  ;;  %v2199_v10 = vld [vmem:[#allocation7 + $0xa8] sm:$0xf] }
  0x50   :  { %v2200_v19 = vor.u32 %v2949_v11, %v2199_v10  ;;  %v2927_v10 = vld [vmem:[#allocation7 + $0xc] sm:$0xf]  ;;  %v2121_v11 = vld [vmem:[#allocation7 + $0x18] sm:$0xf0] }
  0x51   :  { %692 = vmatpush.bf16.msrb.mxu2 %v2328_v13  ;;  %706 = vmatpush.bf16.msrb.mxu3 %v2188_v31  ;;  %v2959_v13 = vld [vmem:[#allocation7 + $0x10c] sm:$0xf]  ;;  %v2124_v15 = vor.u32 %v2927_v10, %v2121_v11  ;;  %v3018_v31 = vld [vmem:[#allocation8 + $0xe4] sm:$0xf] }
  0x52   :  { %679 = vmatpush.bf16.msrb.mxu1 %v2200_v19  ;;  %v2252_v16 = vor.u32 %v2959_v13, %v2249_v14  ;;  %v2564_v13 = vld [vmem:[#allocation8 + $0x190] sm:$0xf0] }
  0x53   :  { %669 = vmatpush.bf16.msrb.mxu0 %v2276_v23  ;;  %v2183_v23 = vld [vmem:[#allocation7 + $0x88] sm:$0xf] }
  0x54   :  { %v2184_v26 = vor.u32 %v2945_v24, %v2183_v23  ;;  %v2610_v23 = vld [vmem:[#allocation8 + $0x1e0] sm:$0xf]  ;;  %v3052_v24 = vld [vmem:[#allocation8 + $0x1ec] sm:$0xf0] }
  0x55   :  { %707 = vmatpush.bf16.msrb.mxu3 %v2172_v43  ;;  %v3014_v43 = vld [vmem:[#allocation8 + $0xc4] sm:$0xf] }
  0x56   :  { %680 = vmatpush.bf16.msrb.mxu1 %v2184_v26  ;;  %v2611_v26 = vor.u32 %v3052_v24, %v2610_v23  ;;  %v3032_v23 = vld [vmem:[#allocation8 + $0x14c] sm:$0xf0]  ;;  %v3002_v24 = vld [vmem:[#allocation8 + $0x64] sm:$0xf] }
  0x57   :  { %670 = vmatpush.bf16.msrb.mxu0 %v2260_v38  ;;  %v2168_v38 = vor.u32 %v2941_v36, %v2167_v35  ;;  %v3050_v35 = vld [vmem:[#allocation8 + $0x1e4] sm:$0xf]  ;;  %v2612_v36 = vld [vmem:[#allocation8 + $0x1f0] sm:$0xf0] }
  0x58   :  { %v2615_v37 = vor.u32 %v3050_v35, %v2612_v36  ;;  %v3028_v36 = vld [vmem:[#allocation8 + $0x12c] sm:$0xf0] }
  0x5a   :  { %681 = vmatpush.bf16.msrb.mxu1 %v2168_v38  ;;  %v2466_v38 = vld [vmem:[#allocation8 + $0xc0] sm:$0xf] }
  0x5b   :  { %671 = vmatpush.bf16.msrb.mxu0 %v2244_v55  ;;  %v2156_v55 = vor.u32 %v2935_v52, %v2153_v53  ;;  %v2467_v41 = vor.u32 %v3016_v39, %v2466_v38  ;;  %v2450_v52 = vld [vmem:[#allocation8 + $0xa0] sm:$0xf]  ;;  %v3012_v53 = vld [vmem:[#allocation8 + $0xac] sm:$0xf0]  ;;  %v2404_v39 = vld [vmem:[#allocation8 + $0x50] sm:$0xf0] }
  0x5d   :  { %708 = vmatpush.bf16.msrb.mxu3 %v2156_v55  ;;  %v2451_v55 = vor.u32 %v3012_v53, %v2450_v52  ;;  %v3024_v53 = vld [vmem:[#allocation8 + $0x10c] sm:$0xf0] }
  0x61   :  { %709 = vmatpush.bf16.msrb.mxu3 %v2140_v3  ;;  %v2546_v3 = vld [vmem:[#allocation8 + $0x160] sm:$0xf] }
  0x62   :  { %v2547_v10 = vor.u32 %v3036_v5, %v2546_v3  ;;  %v2370_v3 = vld [vmem:[#allocation8] sm:$0xf]  ;;  %v2990_v5 = vld [vmem:[#allocation8 + $0x4] sm:$0xf] }
  0x65   :  { %710 = vmatpush.bf16.msrb.mxu3 %v2124_v15 }
  0x92   :  { %v145_v50 = vpop.permute.xlu0 %144 }
  0x93   :  { %vm146_vm0 = vcmp.eq.s32.totalorder %v142_v22, %v145_v50  ;;  %v2312_v22 = vor.u32 %v2977_v18, %v2311_v17  ;;  %v2152_v50 = vor.u32 %v2937_v48, %v2151_v47  ;;  %v2471_v47 = vor.u32 %v3014_v43, %v2468_v44  ;;  %v3046_v48 = vld [vmem:[#allocation8 + $0x1c4] sm:$0xf] }
  0x94   :  { %vm2107_vm1 = vmpackc.low %vm146_vm0, %vm146_vm0  ;;  %v2599_v51 = vor.u32 %v3046_v48, %v2596_v49  ;;  %v2996_v48 = vld [vmem:[#allocation8 + $0x2c] sm:$0xf0]  ;;  %v2498_v49 = vld [vmem:[#allocation8 + $0x100] sm:$0xf] }
  0x95   :  { %2108 = vmatmul.msk.bf16.vlgmr.msra.gmra.mxu0 %vm2107_vm1, %v3434_v63  ;;  %693 = vmatpush.bf16.msrb.mxu2 %v2312_v22  ;;  %v2961_v63 = vld [vmem:[#allocation7 + $0x114] sm:$0xf0] }
  0x96   :  { %716 = vmatpush.bf16.msra.mxu0 %v2364_v60  ;;  %682 = vmatpush.bf16.msrb.mxu1 %v2152_v50  ;;  %v2933_v60 = vld [vmem:[#allocation7 + $0x34] sm:$0xf0]  ;;  %v2248_v2 = vor.u32 %v2961_v63, %v2247_v61  ;;  %v2580_v61 = vld [vmem:[#allocation8 + $0x1b0] sm:$0xf0] }
  0x97   :  { %v2136_v62 = vor.u32 %v2933_v60, %v2135_v59  ;;  %v2452_v59 = vld [vmem:[#allocation8 + $0xb0] sm:$0xf0]  ;;  %v3042_v60 = vld [vmem:[#allocation8 + $0x1a4] sm:$0xf] }
  0x98   :  { %v2455_v63 = vor.u32 %v3010_v57, %v2452_v59  ;;  %v2583_v0 = vor.u32 %v3042_v60, %v2580_v61  ;;  %v2388_v57 = vld [vmem:[#allocation8 + $0x30] sm:$0xf0] }
  0x99   :  { %694 = vmatpush.bf16.msrb.mxu2 %v2296_v30  ;;  %v3048_v30 = vld [vmem:[#allocation8 + $0x1cc] sm:$0xf0] }
  0x9a   :  { %717 = vmatpush.bf16.msra.mxu0 %v2348_v9  ;;  %v2929_v9 = vld [vmem:[#allocation7 + $0x14] sm:$0xf0]  ;;  %683 = vmatpush.bf16.msrb.mxu1 %v2136_v62  ;;  %v3581_v62 = vld [vmem:[%s3755_s5] sm:$0xf] }
  0x9b   :  { %v2120_v12 = vor.u32 %v2929_v9, %v2119_v7  ;;  %v3006_v7 = vld [vmem:[#allocation8 + $0x84] sm:$0xf]  ;;  %v297_v14 = vperm.slane %v3581_v62, 0  ;;  %v298_v43 = vperm.slane %v3581_v62, 1 }
  0x9d   :  { %695 = vmatpush.bf16.msrb.mxu2 %v2280_v42  ;;  %v3044_v42 = vld [vmem:[#allocation8 + $0x1ac] sm:$0xf0] }
  0x9e   :  { %718 = vmatpush.bf16.msra.mxu0 %v2332_v21  ;;  %684 = vmatpush.bf16.msrb.mxu1 %v2120_v12  ;;  %v3038_v12 = vld [vmem:[#allocation8 + $0x184] sm:$0xf] }
  0x9f   :  { %v2567_v15 = vor.u32 %v3038_v12, %v2564_v13 }
  0xa1   :  { %696 = vmatpush.bf16.msrb.mxu2 %v2264_v54  ;;  %v2562_v54 = vld [vmem:[#allocation8 + $0x180] sm:$0xf] }
  0xa2   :  { %719 = vmatpush.bf16.msra.mxu0 %v2316_v34  ;;  %v2487_v34 = vor.u32 %v3018_v31, %v2484_v32  ;;  %v2402_v31 = vld [vmem:[#allocation8 + $0x40] sm:$0xf]  ;;  %v3000_v32 = vld [vmem:[#allocation8 + $0x4c] sm:$0xf0] }
  0xa3   :  { %v2403_v35 = vor.u32 %v3000_v32, %v2402_v31 }
  0xa5   :  { %672 = vmatmul.bf16.vlgmr.msrb.gmra.mxu0 %v3564_v6  ;;  %697 = vmatpush.bf16.msrb.mxu2 %v2248_v2  ;;  %v3008_v2 = vld [vmem:[#allocation8 + $0x8c] sm:$0xf0] }
  0xa6   :  { %720 = vmatpush.bf16.msra.mxu0 %v2300_v46  ;;  %v2579_v46 = vor.u32 %v3044_v42, %v2578_v40  ;;  %v2435_v4 = vor.u32 %v3008_v2, %v2434_v1  ;;  %v3030_v40 = vld [vmem:[#allocation8 + $0x144] sm:$0xf] }
  0xa8   :  { %698 = vmatmul.bf16.vlgmr.msrb.gmra.mxu2 %v3564_v6 }
  0xa9   :  { %1207 = vmatpush.bf16.msra.mxu2 %v2611_v26 }
  0xaa   :  { %721 = vmatpush.bf16.msra.mxu0 %v2284_v58  ;;  %v2563_v58 = vor.u32 %v3040_v56, %v2562_v54  ;;  %v2994_v54 = vld [vmem:[#allocation8 + $0x24] sm:$0xf]  ;;  %v2499_v56 = vor.u32 %v3024_v53, %v2498_v49 }
  0xab   :  { %v2391_v60 = vor.u32 %v2994_v54, %v2388_v57 }
  0xae   :  { %722 = vmatpush.bf16.msra.mxu0 %v2268_v8  ;;  %v2436_v8 = vld [vmem:[#allocation8 + $0x90] sm:$0xf0] }
  0xaf   :  { %v2439_v11 = vor.u32 %v3006_v7, %v2436_v8 }
  0xb2   :  { %723 = vmatpush.bf16.msra.mxu0 %v2252_v16 }
  0xb5   :  { %724 = vmatmul.bf16.vlgmr.msra.gmra.mxu0 %v3564_v6  ;;  %v2594_v6 = vld [vmem:[#allocation8 + $0x1c0] sm:$0xf] }
  0xb6   :  { %v2595_v33 = vor.u32 %v3048_v30, %v2594_v6  ;;  %1233 = vmatpush.bf16.msrb.mxu0 %v2615_v37  ;;  %v2548_v6 = vld [vmem:[#allocation8 + $0x170] sm:$0xf0]  ;;  %v2998_v37 = vld [vmem:[#allocation8 + $0x44] sm:$0xf] }
  0xb7   :  { %v2407_v44 = vor.u32 %v2998_v37, %v2404_v39  ;;  %v2476_v37 = vld [vmem:[#allocation8 + $0xd8] sm:$0xf0] }
  0xb8   :  { %1208 = vmatpush.bf16.msra.mxu2 %v2595_v33  ;;  %v2514_v33 = vld [vmem:[#allocation8 + $0x120] sm:$0xf]  ;;  %v2604_v39 = vld [vmem:[#allocation8 + $0x1d8] sm:$0xf0] }
  0xb9   :  { %v2515_v38 = vor.u32 %v3028_v36, %v2514_v33 }
  0xba   :  { %1234 = vmatpush.bf16.msrb.mxu0 %v2599_v51 }
  0xbc   :  { %1209 = vmatpush.bf16.msra.mxu2 %v2579_v46 }
  0xbe   :  { %1235 = vmatpush.bf16.msrb.mxu0 %v2583_v0  ;;  %v3053_v0 = vld [vmem:[#allocation8 + $0x1f4] sm:$0xf0] }
  0xc0   :  { %1210 = vmatpush.bf16.msra.mxu2 %v2563_v58  ;;  %v3026_v58 = vld [vmem:[#allocation8 + $0x124] sm:$0xf] }
  0xc2   :  { %1236 = vmatpush.bf16.msrb.mxu0 %v2567_v15  ;;  %v3021_v15 = vld [vmem:[#allocation8 + $0xf4] sm:$0xf0] }
  0xc4   :  { %1211 = vmatpush.bf16.msra.mxu2 %v2547_v10  ;;  %v3022_v10 = vld [vmem:[#allocation8 + $0x104] sm:$0xf] }
  0xcb   :  { %v3572_v21 = vpop.f32.mrf.mxu2 }
  0xd3   :  { %v649_v25 = vpop.f32.mrf.mxu2 }
  0xd4   :  { %v2420_v25 = vld [vmem:[#allocation8 + $0x70] sm:$0xf0] }
  0xd5   :  { %v2423_v27 = vor.u32 %v3002_v24, %v2420_v25  ;;  %v2492_v24 = vld [vmem:[#allocation8 + $0xf8] sm:$0xf0] }
  0xd6   :  { %v2620_v25 = vld [vmem:[#allocation8 + $0x1f8] sm:$0xf0] }
 0x112   :  { %v223_v17 = vpop.f32.mrf.mxu0 }
 0x113   :  { %v227_v18 = vpack.c.bf16 %v223_v17, %v223_v17  ;;  %v2418_v17 = vld [vmem:[#allocation8 + $0x60] sm:$0xf] }
 0x115   :  { %633 = vmatmul.bf16.vlgmr.msra.gmra.mxu1 %v227_v18  ;;  %659 = vmatmul.bf16.vlgmr.msra.gmra.mxu3 %v227_v18 }
 0x116   :  { %1194 = vmatpush.bf16.msra.mxu1 %v2483_v29  ;;  %1220 = vmatpush.bf16.msra.mxu3 %v2487_v34  ;;  %v2551_v29 = vor.u32 %v3034_v28, %v2548_v6  ;;  %v2474_v6 = vld [vmem:[#allocation8 + $0xc8] sm:$0xf] }
 0x118   :  { %1237 = vmatpush.bf16.msrb.mxu0 %v2551_v29  ;;  %v3017_v29 = vld [vmem:[#allocation8 + $0xd4] sm:$0xf0] }
 0x119   :  { %v2475_v33 = vor.u32 %v3017_v29, %v2474_v6  ;;  %v3033_v29 = vld [vmem:[#allocation8 + $0x154] sm:$0xf0] }
 0x11a   :  { %v225_v19 = vpop.f32.mrf.mxu0  ;;  %1195 = vmatpush.bf16.msra.mxu1 %v2467_v41  ;;  %1221 = vmatpush.bf16.msra.mxu3 %v2471_v47  ;;  %v2532_v41 = vld [vmem:[#allocation8 + $0x150] sm:$0xf0]  ;;  %v2386_v47 = vld [vmem:[#allocation8 + $0x20] sm:$0xf] }
 0x11b   :  { %v2530_v19 = vld [vmem:[#allocation8 + $0x140] sm:$0xf]  ;;  %v2535_v46 = vor.u32 %v3030_v40, %v2532_v41  ;;  %v2387_v52 = vor.u32 %v2996_v48, %v2386_v47  ;;  %v2458_v41 = vld [vmem:[#allocation8 + $0xa8] sm:$0xf]  ;;  %v3041_v48 = vld [vmem:[#allocation8 + $0x194] sm:$0xf0] }
 0x11c   :  { %v2531_v26 = vor.u32 %v3032_v23, %v2530_v19  ;;  %v3049_v19 = vld [vmem:[#allocation8 + $0x1d4] sm:$0xf0]  ;;  %v2570_v47 = vld [vmem:[#allocation8 + $0x188] sm:$0xf] }
 0x11d   :  { %1238 = vmatpush.bf16.msrb.mxu0 %v2535_v46  ;;  %v3013_v46 = vld [vmem:[#allocation8 + $0xb4] sm:$0xf0]  ;;  %v2571_v54 = vor.u32 %v3041_v48, %v2570_v47  ;;  %v2999_v48 = vld [vmem:[#allocation8 + $0x4c] sm:$0xf] }
 0x11e   :  { %1196 = vmatpush.bf16.msra.mxu1 %v2451_v55  ;;  %1222 = vmatpush.bf16.msra.mxu3 %v2455_v63  ;;  %v2618_v63 = vld [vmem:[#allocation8 + $0x1e8] sm:$0xf]  ;;  %v2459_v53 = vor.u32 %v3013_v46, %v2458_v41  ;;  %v3029_v47 = vld [vmem:[#allocation8 + $0x134] sm:$0xf0] }
 0x11f   :  { %1212 = vmatpush.bf16.msra.mxu2 %v2531_v26  ;;  %v2619_v2 = vor.u32 %v3053_v0, %v2618_v63  ;;  %v2522_v41 = vld [vmem:[#allocation8 + $0x128] sm:$0xf] }
 0x122   :  { %v3570_v20 = vpop.f32.mrf.mxu0  ;;  %1197 = vmatpush.bf16.msra.mxu1 %v2435_v4  ;;  %1223 = vmatpush.bf16.msra.mxu3 %v2439_v11  ;;  %v2992_v4 = vld [vmem:[#allocation8 + $0xc] sm:$0xf0]  ;;  %v2500_v11 = vld [vmem:[#allocation8 + $0x110] sm:$0xf0] }
 0x123   :  { %1213 = vmatpush.bf16.msra.mxu2 %v2515_v38  ;;  %v2371_v8 = vor.u32 %v2992_v4, %v2370_v3  ;;  %v2503_v13 = vor.u32 %v3022_v10, %v2500_v11  ;;  %v3047_v38 = vld [vmem:[#allocation8 + $0x1cc] sm:$0xf]  ;;  %v2444_v4 = vld [vmem:[#allocation8 + $0x98] sm:$0xf0] }
 0x124   :  { %v3007_v3 = vld [vmem:[#allocation8 + $0x8c] sm:$0xf] }
 0x125   :  { %685 = vmatmul.bf16.vlgmr.msrb.gmra.mxu1 %v227_v18  ;;  %711 = vmatmul.bf16.vlgmr.msrb.gmra.mxu3 %v227_v18  ;;  %v3004_v18 = vld [vmem:[#allocation8 + $0x6c] sm:$0xf0] }
 0x126   :  { %1224 = vmatpush.bf16.msra.mxu3 %v2423_v27 }
 0x127   :  { %1214 = vmatpush.bf16.msra.mxu2 %v2499_v56  ;;  %v2460_v56 = vld [vmem:[#allocation8 + $0xb8] sm:$0xf0] }
 0x12a   :  { %v675_v22 = vpop.f32.mrf.mxu0  ;;  %1225 = vmatpush.bf16.msra.mxu3 %v2407_v44  ;;  %v2607_v44 = vor.u32 %v3047_v38, %v2604_v39  ;;  %v2410_v39 = vld [vmem:[#allocation8 + $0x48] sm:$0xf] }
 0x12b   :  { %v3576_v50 = vpop.f32.mrf.mxu2  ;;  %v2419_v22 = vor.u32 %v3004_v18, %v2418_v17  ;;  %1259 = vmatpush.bf16.msrb.mxu2 %v2619_v2  ;;  %v3037_v2 = vld [vmem:[#allocation8 + $0x174] sm:$0xf0] }
 0x12d   :  { %1198 = vmatpush.bf16.msra.mxu1 %v2419_v22  ;;  %v3019_v22 = vld [vmem:[#allocation8 + $0xec] sm:$0xf] }
 0x12e   :  { %1226 = vmatpush.bf16.msra.mxu3 %v2391_v60  ;;  %v2495_v27 = vor.u32 %v3019_v22, %v2492_v24  ;;  %v2442_v60 = vld [vmem:[#allocation8 + $0x88] sm:$0xf] }
 0x12f   :  { %v2426_v24 = vld [vmem:[#allocation8 + $0x68] sm:$0xf] }
 0x131   :  { %1199 = vmatpush.bf16.msra.mxu1 %v2403_v35  ;;  %v3015_v35 = vld [vmem:[#allocation8 + $0xcc] sm:$0xf] }
 0x132   :  { %v3574_v45 = vpop.f32.mrf.mxu0 }
 0x133   :  { %v701_v16 = vpop.f32.mrf.mxu2 }
 0x134   :  { %v2602_v16 = vld [vmem:[#allocation8 + $0x1c8] sm:$0xf] }
 0x135   :  { %1200 = vmatpush.bf16.msra.mxu1 %v2387_v52  ;;  %v2603_v23 = vor.u32 %v3049_v19, %v2602_v16  ;;  %v300_v52 = vperm.slane %v3581_v62, 3 }
 0x137   :  { %1260 = vmatpush.bf16.msrb.mxu2 %v2603_v23 }
 0x139   :  { %1201 = vmatpush.bf16.msra.mxu1 %v2371_v8 }
 0x13a   :  { %v727_v9 = vpop.f32.mrf.mxu0 }
 0x13b   :  { %v2372_v9 = vld [vmem:[#allocation8 + $0x10] sm:$0xf0] }
 0x13c   :  { %v2375_v12 = vor.u32 %v2990_v5, %v2372_v9  ;;  %v3039_v9 = vld [vmem:[#allocation8 + $0x18c] sm:$0xf] }
 0x13e   :  { %1227 = vmatpush.bf16.msra.mxu3 %v2375_v12 }
 0x142   :  { %1272 = vmatpush.bf16.msrb.mxu3 %v2495_v27 }
 0x192   :  { %v634_v30 = vpop.f32.mrf.mxu1 }
 0x193   :  { %v635_v34 = vadd.f32 %v634_v30, %v297_v14  ;;  %v2490_v14 = vld [vmem:[#allocation8 + $0xe8] sm:$0xf] }
 0x194   :  { %v2491_v18 = vor.u32 %v3021_v15, %v2490_v14  ;;  %v2586_v30 = vld [vmem:[#allocation8 + $0x1a8] sm:$0xf]  ;;  %v2572_v14 = vld [vmem:[#allocation8 + $0x198] sm:$0xf0] }
 0x195   :  { %v648_v42 = vadd.f32 %v3572_v21, %v635_v34  ;;  %v2516_v21 = vld [vmem:[#allocation8 + $0x130] sm:$0xf0]  ;;  %v3045_v34 = vld [vmem:[#allocation8 + $0x1b4] sm:$0xf0] }
 0x196   :  { %v2519_v61 = vor.u32 %v3026_v58, %v2516_v21  ;;  %1246 = vmatpush.bf16.msrb.mxu1 %v2491_v18  ;;  %v2587_v36 = vor.u32 %v3045_v34, %v2586_v30  ;;  %v3043_v21 = vld [vmem:[#allocation8 + $0x1ac] sm:$0xf]  ;;  %v2575_v18 = vor.u32 %v3039_v9, %v2572_v14  ;;  %v2428_v34 = vld [vmem:[#allocation8 + $0x78] sm:$0xf0] }
 0x197   :  { %v2365_v51 = vmul.f32 -1.442695, %v648_v42  ;;  %v796_v42 = vld [vmem:[#allocation2 + $0x8] sm:$0xff]  ;;  %v3003_v30 = vld [vmem:[#allocation8 + $0x6c] sm:$0xf] }
 0x198   :  { %v660_v55 = vpop.f32.mrf.mxu3  ;;  %1239 = vmatpush.bf16.msrb.mxu0 %v2519_v61  ;;  %v3590_v49 = vpack.c.bf16 %v796_v42, %v796_v42  ;;  %1261 = vmatpush.bf16.msrb.mxu2 %v2587_v36  ;;  %v2556_v36 = vld [vmem:[#allocation8 + $0x178] sm:$0xf0]  ;;  %v229_v14 = vld [vmem:[#allocation5] sm:$0xff] }
 0x199   :  { %3145 = vpow2.f32 %v2365_v51  ;;  %v661_v59 = vadd.f32 %v660_v55, %v298_v43  ;;  %v2479_v43 = vor.u32 %v3015_v35, %v2476_v37  ;;  %v299_v51 = vperm.slane %v3581_v62, 2  ;;  %v3011_v55 = vld [vmem:[#allocation8 + $0xac] sm:$0xf]  ;;  %v3009_v62 = vld [vmem:[#allocation8 + $0x94] sm:$0xf0] }
 0x19a   :  { %v636_v1 = vpop.f32.mrf.mxu1  ;;  %1247 = vmatpush.bf16.msrb.mxu1 %v2475_v33  ;;  %v2463_v58 = vor.u32 %v3011_v55, %v2460_v56  ;;  %1215 = vmatmul.bf16.vlgmr.msra.gmra.mxu2 %v3590_v49  ;;  %v2443_v8 = vor.u32 %v3009_v62, %v2442_v60  ;;  %v3035_v35 = vld [vmem:[#allocation8 + $0x16c] sm:$0xf]  ;;  %v2412_v55 = vld [vmem:[#allocation8 + $0x58] sm:$0xf0]  ;;  %v3025_v62 = vld [vmem:[#allocation8 + $0x114] sm:$0xf0] }
 0x19b   :  { %v674_v7 = vadd.f32 %v3570_v20, %v661_v59  ;;  %v3051_v20 = vld [vmem:[#allocation8 + $0x1ec] sm:$0xf]  ;;  %1273 = vmatpush.bf16.msrb.mxu3 %v2479_v43  ;;  %v2588_v59 = vld [vmem:[#allocation8 + $0x1b8] sm:$0xf0]  ;;  %v2554_v1 = vld [vmem:[#allocation8 + $0x168] sm:$0xf]  ;;  %v2431_v43 = vor.u32 %v3003_v30, %v2428_v34 }
 0x19c   :  { %1240 = vmatpush.bf16.msrb.mxu0 %v2503_v13  ;;  %v2623_v28 = vor.u32 %v3051_v20, %v2620_v25  ;;  %v2591_v0 = vor.u32 %v3043_v21, %v2588_v59  ;;  %1262 = vmatpush.bf16.msrb.mxu2 %v2571_v54  ;;  %v2555_v13 = vor.u32 %v3037_v2, %v2554_v1  ;;  %v3005_v20 = vld [vmem:[#allocation8 + $0x74] sm:$0xf0]  ;;  %v2538_v25 = vld [vmem:[#allocation8 + $0x148] sm:$0xf]  ;;  %v3031_v56 = vld [vmem:[#allocation8 + $0x14c] sm:$0xf] }
 0x19d   :  { %v2366_v17 = vmul.f32 -1.442695, %v674_v7  ;;  %v2427_v6 = vor.u32 %v3005_v20, %v2426_v24  ;;  %v2539_v33 = vor.u32 %v3033_v29, %v2538_v25  ;;  %v2523_v54 = vor.u32 %v3029_v47, %v2522_v41  ;;  %v2394_v21 = vld [vmem:[#allocation8 + $0x28] sm:$0xf]  ;;  %v2997_v59 = vld [vmem:[#allocation8 + $0x34] sm:$0xf0] }
 0x19e   :  { %1248 = vmatpush.bf16.msrb.mxu1 %v2459_v53  ;;  %v2995_v1 = vld [vmem:[#allocation8 + $0x2c] sm:$0xf]  ;;  %v2395_v2 = vor.u32 %v2997_v59, %v2394_v21  ;;  %v2508_v20 = vld [vmem:[#allocation8 + $0x118] sm:$0xf0]  ;;  %v2869_v47 = vld [vmem:[#allocation10 + $0x1e0] sm:$0xf] }
 0x19f   :  { %v3146_v26 = vpop.eup %3145  ;;  %3147 = vpow2.f32 %v2366_v17  ;;  %1241 = vmatmul.bf16.vlgmr.msrb.gmra.mxu0 %v3590_v49  ;;  %1274 = vmatpush.bf16.msrb.mxu3 %v2463_v58  ;;  %v2447_v17 = vor.u32 %v3007_v3, %v2444_v4  ;;  %v2540_v58 = vld [vmem:[#allocation8 + $0x158] sm:$0xf0]  ;;  %v3023_v24 = vld [vmem:[#allocation8 + $0x10c] sm:$0xf]  ;;  %v3084_v53 = vld [vmem:[#allocation10 + $0xec] sm:$0xf0] }
 0x1a0   :  { %v3587_v31 = vadd.f32 1.0, %v3146_v26  ;;  %v662_v32 = vpop.f32.mrf.mxu3  ;;  %1285 = vmatpush.bf16.msra.mxu0 %v2623_v28  ;;  %1263 = vmatpush.bf16.msrb.mxu2 %v2555_v13  ;;  %v2396_v4 = vld [vmem:[#allocation8 + $0x38] sm:$0xf0]  ;;  %v2993_v13 = vld [vmem:[#allocation8 + $0x14] sm:$0xf0]  ;;  %v2511_v29 = vor.u32 %v3023_v24, %v2508_v20 }
 0x1a1   :  { %v3106_v24 = vld [vmem:[#allocation10 + $0x1a4] sm:$0xf]  ;;  %v2839_v20 = vld [vmem:[#allocation10 + $0x1b0] sm:$0xf0] }
 0x1a2   :  { %3149 = vrcp.f32 %v3587_v31  ;;  %v686_v40 = vpop.f32.mrf.mxu1  ;;  %v744_v63 = vand.u32 2147483648, %v3587_v31  ;;  %v742_v11 = vand.u32 2147483647, %v3587_v31  ;;  %1249 = vmatpush.bf16.msrb.mxu1 %v2443_v8  ;;  %vm738_vm4 = vweird.f32 %v3587_v31  ;;  %v2524_v8 = vld [vmem:[#allocation8 + $0x138] sm:$0xf0] }
 0x1a3   :  { %v687_v15 = vadd.f32 %v686_v40, %v299_v51  ;;  %1275 = vmatpush.bf16.msrb.mxu3 %v2447_v17  ;;  %v3001_v40 = vld [vmem:[#allocation8 + $0x54] sm:$0xf0] }
 0x1a4   :  { %1286 = vmatpush.bf16.msra.mxu0 %v2607_v44  ;;  %v3605_v22 = vor.u32 1.1754944e-38, %v744_v63  ;;  %vm3609_vm2 = vcmp.eq.f32.partialorder %v742_v11, 8.507059e+37  ;;  %1264 = vmatpush.bf16.msrb.mxu2 %v2539_v33  ;;  %v2559_v44 = vor.u32 %v3035_v35, %v2556_v36  ;;  %v2411_v46 = vor.u32 %v3001_v40, %v2410_v39 }
 0x1a5   :  { %v3148_v57 = vpop.eup %3147  ;;  %v2543_v63 = vor.u32 %v3031_v56, %v2540_v58  ;;  %v3112_v56 = vld [vmem:[#allocation10 + $0x1cc] sm:$0xf0]  ;;  %v2743_v58 = vld [vmem:[#allocation10 + $0xf0] sm:$0xf0] }
 0x1a6   :  { %v3594_v61 = vadd.f32 1.0, %v3148_v57  ;;  %1250 = vmatpush.bf16.msrb.mxu1 %v2427_v6  ;;  %v2415_v57 = vor.u32 %v2999_v48, %v2412_v55  ;;  %v3116_v48 = vld [vmem:[#allocation10 + $0x1ec] sm:$0xf0] }
 0x1a7   :  { %1276 = vmatpush.bf16.msrb.mxu3 %v2431_v43 }
 0x1a8   :  { %v3599_v5 = vpop.eup %3149  ;;  %3151 = vrcp.f32 %v3594_v61  ;;  %v712_v7 = vpop.f32.mrf.mxu3  ;;  %1287 = vmatpush.bf16.msra.mxu0 %v2591_v0  ;;  %v761_v42 = vand.u32 2147483647, %v3594_v61  ;;  %v2506_v0 = vld [vmem:[#allocation8 + $0x108] sm:$0xf]  ;;  %1265 = vmatpush.bf16.msrb.mxu2 %v2523_v54  ;;  %vm757_vm7 = vweird.f32 %v3594_v61  ;;  %v2853_v54 = vld [vmem:[#allocation10 + $0x1c0] sm:$0xf] }
 0x1a9   :  { %v734_v10 = vmul.f32 %v3599_v5, %v3587_v31  ;;  %v713_v12 = vadd.f32 %v712_v7, %v300_v52  ;;  %vm739_vm3 = vweird.f32 %v3599_v5  ;;  %v763_v52 = vand.u32 2147483648, %v3594_v61  ;;  %v3027_v7 = vld [vmem:[#allocation8 + $0x12c] sm:$0xf] }
 0x1aa   :  { %v688_v16 = vpop.f32.mrf.mxu1  ;;  %vm3627_vm5 = vmor %vm738_vm4, %vm739_vm3  ;;  %1251 = vmatpush.bf16.msrb.mxu1 %v2411_v46  ;;  %v2507_v3 = vor.u32 %v3025_v62, %v2506_v0  ;;  %vm3638_vm8 = vcmp.eq.f32.partialorder %v761_v42, 8.507059e+37  ;;  %v2527_v17 = vor.u32 %v3027_v7, %v2524_v8  ;;  %v2854_v21 = vor.u32 %v3112_v56, %v2853_v54  ;;  %v2725_v0 = vld [vmem:[#allocation10 + $0xc0] sm:$0xf]  ;;  %v3080_v62 = vld [vmem:[#allocation10 + $0xcc] sm:$0xf0] }
 0x1ab   :  { %v735_v19 = vsub.f32 1.0, %v734_v10  ;;  %v726_v23 = vadd.f32 %v3574_v45, %v713_v12  ;;  %v700_v45 = vadd.f32 %v3576_v50, %v687_v15  ;;  %v764_v11 = vor.u32 1.1754944e-38, %v763_v52  ;;  %v2378_v12 = vld [vmem:[#allocation8 + $0x8] sm:$0xf]  ;;  %1277 = vmatpush.bf16.msrb.mxu3 %v2415_v57  ;;  %v2741_v52 = vld [vmem:[#allocation10 + $0xe0] sm:$0xf] }
 0x1ac   :  { %1288 = vmatpush.bf16.msra.mxu0 %v2575_v18  ;;  %v2991_v18 = vld [vmem:[#allocation8 + $0xc] sm:$0xf]  ;;  %1266 = vmatpush.bf16.msrb.mxu2 %v2507_v3  ;;  %v2742_v55 = vor.u32 %v3084_v53, %v2741_v52  ;;  %v3082_v57 = vld [vmem:[#allocation10 + $0xe4] sm:$0xf]  ;;  %v3108_v3 = vld [vmem:[#allocation10 + $0x1ac] sm:$0xf0] }
 0x1ad   :  { %v736_v26 = vmul.f32 %v3599_v5, %v735_v19  ;;  %v2367_v28 = vmul.f32 -1.442695, %v726_v23  ;;  %v2380_v23 = vld [vmem:[#allocation8 + $0x18] sm:$0xf0]  ;;  %v2746_v59 = vor.u32 %v3082_v57, %v2743_v58  ;;  %v2727_v7 = vld [vmem:[#allocation10 + $0xd0] sm:$0xf0] }
 0x1ae   :  { %v3613_v32 = vpop.eup %3151  ;;  %1252 = vmatpush.bf16.msrb.mxu1 %v2395_v2  ;;  %v2383_v6 = vor.u32 %v2991_v18, %v2380_v23  ;;  %v2726_v2 = vor.u32 %v3080_v62, %v2725_v0  ;;  %v3074_v18 = vld [vmem:[#allocation10 + $0xa4] sm:$0xf]  ;;  %v2711_v23 = vld [vmem:[#allocation10 + $0xb0] sm:$0xf0] }
 0x1af   :  { %v753_v37 = vmul.f32 %v3613_v32, %v3594_v61  ;;  %v737_v38 = vadd.f32 %v3599_v5, %v736_v26  ;;  %3153 = vpow2.f32 %v2367_v28  ;;  %vm758_vm6 = vweird.f32 %v3613_v32  ;;  %1267 = vmatmul.bf16.vlgmr.msrb.gmra.mxu2 %v3590_v49  ;;  %v3098_v53 = vld [vmem:[#allocation10 + $0x164] sm:$0xf]  ;;  %v2807_v54 = vld [vmem:[#allocation10 + $0x170] sm:$0xf0] }
 0x1b0   :  { %v714_v50 = vpop.f32.mrf.mxu3  ;;  %3155 = vtanh.f32 %v700_v45  ;;  %1289 = vmatpush.bf16.msra.mxu0 %v2559_v44  ;;  %vm759_vm9 = vmor %vm757_vm7, %vm758_vm6  ;;  %v2399_v61 = vor.u32 %v2995_v1, %v2396_v4  ;;  %v2837_v1 = vld [vmem:[#allocation10 + $0x1a0] sm:$0xf]  ;;  %v3078_v4 = vld [vmem:[#allocation10 + $0xc4] sm:$0xf]  ;;  %v2810_v56 = vor.u32 %v3098_v53, %v2807_v54 }
 0x1b1   :  { %v754_v51 = vsub.f32 1.0, %v753_v37  ;;  %v741_v31 = vsel %vm3627_vm5, %v3599_v5, %v737_v38  ;;  %v2838_v8 = vor.u32 %v3108_v3, %v2837_v1  ;;  %v2855_v5 = vld [vmem:[#allocation10 + $0x1d0] sm:$0xf0]  ;;  %v3062_v0 = vld [vmem:[#allocation10 + $0x44] sm:$0xf] }
 0x1b2   :  { %v746_v15 = vsel %vm3609_vm2, %v3605_v22, %v741_v31  ;;  %v2379_v22 = vor.u32 %v2993_v13, %v2378_v12  ;;  %1278 = vmatpush.bf16.msrb.mxu3 %v2399_v61  ;;  %v2871_v31 = vld [vmem:[#allocation10 + $0x1f0] sm:$0xf0]  ;;  %v3094_v3 = vld [vmem:[#allocation10 + $0x144] sm:$0xf] }
 0x1b3   :  { %v755_v60 = vmul.f32 %v3613_v32, %v754_v51  ;;  %v2870_v51 = vor.u32 %v3116_v48, %v2869_v47  ;;  %v3066_v47 = vld [vmem:[#allocation10 + $0x64] sm:$0xf]  ;;  %v2679_v48 = vld [vmem:[#allocation10 + $0x70] sm:$0xf0] }
 0x1b4   :  { %1290 = vmatpush.bf16.msra.mxu0 %v2543_v63  ;;  %1253 = vmatpush.bf16.msrb.mxu1 %v2379_v22  ;;  %v2842_v22 = vor.u32 %v3106_v24, %v2839_v20  ;;  %v2682_v52 = vor.u32 %v3066_v47, %v2679_v48  ;;  %v2751_v47 = vld [vmem:[#allocation10 + $0xf8] sm:$0xf0]  ;;  %v3115_v48 = vld [vmem:[#allocation10 + $0x1ec] sm:$0xf] }
 0x1b5   :  { %v3154_v9 = vpop.eup %3153  ;;  %v756_v10 = vadd.f32 %v3613_v32, %v755_v60  ;;  %1778 = vmatpush.bf16.msra.mxu2 %v2870_v51  ;;  %v3114_v60 = vld [vmem:[#allocation10 + $0x1e4] sm:$0xf] }
 0x1b6   :  { %v771_v16 = vadd.f32 1.0, %v3154_v9  ;;  %v3156_v25 = vpop.eup %3155  ;;  %1279 = vmatpush.bf16.msrb.mxu3 %v2383_v6  ;;  %v2874_v63 = vor.u32 %v3114_v60, %v2871_v31  ;;  %v2730_v9 = vor.u32 %v3078_v4, %v2727_v7  ;;  %v2805_v6 = vld [vmem:[#allocation10 + $0x160] sm:$0xf]  ;;  %v2791_v4 = vld [vmem:[#allocation10 + $0x150] sm:$0xf0] }
 0x1b7   :  { %v760_v19 = vsel %vm759_vm9, %v3613_v32, %v756_v10  ;;  %v788_v28 = vmul.f32 %v3156_v25, %v746_v15  ;;  %v3110_v10 = vld [vmem:[#allocation10 + $0x1c4] sm:$0xf]  ;;  %v3076_v15 = vld [vmem:[#allocation10 + $0xac] sm:$0xf0]  ;;  %v2773_v31 = vld [vmem:[#allocation10 + $0x120] sm:$0xf] }
 0x1b8   :  { %v765_v26 = vsel %vm3638_vm8, %v764_v11, %v760_v19  ;;  %3157 = vrcp.f32 %v771_v16  ;;  %1291 = vmatpush.bf16.msra.mxu0 %v2527_v17  ;;  %v783_v34 = vand.u32 2147483648, %v771_v16  ;;  %v781_v36 = vand.u32 2147483647, %v771_v16  ;;  %v3104_v17 = vld [vmem:[#allocation10 + $0x18c] sm:$0xf0] }
 0x1b9   :  { %v787_v27 = vmul.f32 %v765_v26, %v229_v14  ;;  %vm777_vm11 = vweird.f32 %v771_v16  ;;  %1779 = vmatpush.bf16.msra.mxu2 %v2854_v21  ;;  %v2858_v13 = vor.u32 %v3110_v10, %v2855_v5  ;;  %v2709_v14 = vld [vmem:[#allocation10 + $0xa0] sm:$0xf]  ;;  %v3663_v25 = vld [vmem:[%s3757_s7] sm:$0xf]  ;;  %v2714_v26 = vor.u32 %v3074_v18, %v2711_v23  ;;  %v2647_v18 = vld [vmem:[#allocation10 + $0x30] sm:$0xf0] }
 0x1ba   :  { %v784_v38 = vor.u32 1.1754944e-38, %v783_v34  ;;  %vm782_vm13 = vcmp.eq.f32.partialorder %v781_v36, 8.507059e+37  ;;  %v2710_v61 = vor.u32 %v3076_v15, %v2709_v14  ;;  %v2823_v36 = vld [vmem:[#allocation10 + $0x190] sm:$0xf0]  ;;  %v867_v58 = vperm.slane %v3663_v25, 1 }
 0x1bb   :  { %v789_v30 = vadd.f32 %v788_v28, %v787_v27  ;;  %v2693_v27 = vld [vmem:[#allocation10 + $0x80] sm:$0xf]  ;;  %v3072_v28 = vld [vmem:[#allocation10 + $0x8c] sm:$0xf0]  ;;  %v2775_v23 = vld [vmem:[#allocation10 + $0x130] sm:$0xf0] }
 0x1bc   :  { %1292 = vmatpush.bf16.msra.mxu0 %v2511_v29  ;;  %v2694_v29 = vor.u32 %v3072_v28, %v2693_v27  ;;  %v2661_v21 = vld [vmem:[#allocation10 + $0x40] sm:$0xf]  ;;  %v3060_v5 = vld [vmem:[#allocation10 + $0x2c] sm:$0xf0]  ;;  %v3117_v27 = vld [vmem:[#allocation10 + $0x1f4] sm:$0xf0] }
 0x1bd   :  { %793 = vst [vmem:[#allocation16] sm:$0xff] %v789_v30  ;;  %3159 = vtanh.f32 %v789_v30  ;;  %1780 = vmatpush.bf16.msra.mxu2 %v2838_v8  ;;  %v3100_v30 = vld [vmem:[#allocation10 + $0x16c] sm:$0xf0]  ;;  %v2794_v8 = vor.u32 %v3094_v3, %v2791_v4  ;;  %v2645_v10 = vld [vmem:[#allocation10 + $0x20] sm:$0xf] }
 0x1be   :  { %v3158_v32 = vpop.eup %3157  ;;  %v2646_v14 = vor.u32 %v3060_v5, %v2645_v10  ;;  %v2757_v15 = vld [vmem:[#allocation10 + $0x100] sm:$0xf]  ;;  %v2863_v3 = vld [vmem:[#allocation10 + $0x1d8] sm:$0xf0]  ;;  %v2717_v4 = vld [vmem:[#allocation10 + $0xa8] sm:$0xf] }
 0x1bf   :  { %v773_v45 = vmul.f32 %v3158_v32, %v771_v16  ;;  %1293 = vmatmul.bf16.vlgmr.msra.gmra.mxu0 %v3590_v49  ;;  %vm778_vm10 = vweird.f32 %v3158_v32  ;;  %v2821_v16 = vld [vmem:[#allocation10 + $0x180] sm:$0xf]  ;;  %v3077_v10 = vld [vmem:[#allocation10 + $0xb4] sm:$0xf0]  ;;  %v2829_v5 = vld [vmem:[#allocation10 + $0x188] sm:$0xf] }
 0x1c0   :  { %vm779_vm12 = vmor %vm777_vm11, %vm778_vm10  ;;  %1804 = vmatpush.bf16.msrb.mxu0 %v2874_v63  ;;  %v2822_v19 = vor.u32 %v3104_v17, %v2821_v16  ;;  %v3092_v63 = vld [vmem:[#allocation10 + $0x12c] sm:$0xf0] }
 0x1c1   :  { %v774_v33 = vsub.f32 1.0, %v773_v45  ;;  %v2695_v45 = vld [vmem:[#allocation10 + $0x90] sm:$0xf0]  ;;  %v2774_v1 = vor.u32 %v3092_v63, %v2773_v31  ;;  %v3088_v16 = vld [vmem:[#allocation10 + $0x10c] sm:$0xf0] }
 0x1c2   :  { %1781 = vmatpush.bf16.msra.mxu2 %v2822_v19  ;;  %v2758_v17 = vor.u32 %v3088_v16, %v2757_v15  ;;  %v3090_v19 = vld [vmem:[#allocation10 + $0x124] sm:$0xf]  ;;  %v2735_v63 = vld [vmem:[#allocation10 + $0xd8] sm:$0xf0]  ;;  %v3105_v15 = vld [vmem:[#allocation10 + $0x194] sm:$0xf0] }
 0x1c3   :  { %v775_v35 = vmul.f32 %v3158_v32, %v774_v33  ;;  %v3160_v40 = vpop.eup %3159  ;;  %v2806_v33 = vor.u32 %v3100_v30, %v2805_v6  ;;  %v3056_v30 = vld [vmem:[#allocation10 + $0xc] sm:$0xf0]  ;;  %v3075_v16 = vld [vmem:[#allocation10 + $0xac] sm:$0xf] }
 0x1c4   :  { %1805 = vmatpush.bf16.msrb.mxu0 %v2858_v13 }
 0x1c5   :  { %v776_v37 = vadd.f32 %v3158_v32, %v775_v35  ;;  %v3102_v35 = vld [vmem:[#allocation10 + $0x184] sm:$0xf] }
 0x1c6   :  { %1782 = vmatpush.bf16.msra.mxu2 %v2806_v33  ;;  %v2631_v33 = vld [vmem:[#allocation10 + $0x10] sm:$0xf0] }
 0x1c7   :  { %v780_v39 = vsel %vm779_vm12, %v3158_v32, %v776_v37  ;;  %v3070_v32 = vld [vmem:[#allocation10 + $0x84] sm:$0xf]  ;;  %v866_v37 = vperm.slane %v3663_v25, 0 }
 0x1c8   :  { %v785_v41 = vsel %vm782_vm13, %v784_v38, %v780_v39  ;;  %1806 = vmatpush.bf16.msrb.mxu0 %v2842_v22  ;;  %v2698_v34 = vor.u32 %v3070_v32, %v2695_v45  ;;  %v2826_v39 = vor.u32 %v3102_v35, %v2823_v36  ;;  %v2877_v22 = vld [vmem:[#allocation10 + $0x1e8] sm:$0xf]  ;;  %v3054_v32 = vld [vmem:[#allocation10 + $0x4] sm:$0xf]  ;;  %v2759_v35 = vld [vmem:[#allocation10 + $0x110] sm:$0xf0] }
 0x1c9   :  { %v791_v42 = vmul.f32 %v3160_v40, %v785_v41  ;;  %v2677_v41 = vld [vmem:[#allocation10 + $0x60] sm:$0xf]  ;;  %v2878_v6 = vor.u32 %v3117_v27, %v2877_v22  ;;  %v3073_v22 = vld [vmem:[#allocation10 + $0x94] sm:$0xf0]  ;;  %v2813_v27 = vld [vmem:[#allocation10 + $0x168] sm:$0xf] }
 0x1cb   :  { %v794_v50 = vpack.c.bf16 %v791_v42, %v791_v42  ;;  %792 = vst [vmem:[#allocation14] sm:$0xff] %v791_v42  ;;  %v3068_v42 = vld [vmem:[#allocation10 + $0x6c] sm:$0xf0] }
 0x1cc   :  { %1807 = vmatpush.bf16.msrb.mxu0 %v2826_v39  ;;  %v2749_v39 = vld [vmem:[#allocation10 + $0xe8] sm:$0xf] }
 0x1cd   :  { %1202 = vmatmul.bf16.vlgmr.msra.gmra.mxu1 %v794_v50  ;;  %1228 = vmatmul.bf16.vlgmr.msra.gmra.mxu3 %v794_v50 }
 0x1ce   :  { %1765 = vmatpush.bf16.msra.mxu1 %v2742_v55  ;;  %1791 = vmatpush.bf16.msra.mxu3 %v2746_v59  ;;  %v3064_v59 = vld [vmem:[#allocation10 + $0x4c] sm:$0xf0] }
 0x1cf   :  { %v2662_v60 = vor.u32 %v3064_v59, %v2661_v21  ;;  %v2845_v21 = vld [vmem:[#allocation10 + $0x1a8] sm:$0xf]  ;;  %v3109_v59 = vld [vmem:[#allocation10 + $0x1b4] sm:$0xf0] }
 0x1d0   :  { %1808 = vmatpush.bf16.msrb.mxu0 %v2810_v56  ;;  %v2733_v56 = vld [vmem:[#allocation10 + $0xc8] sm:$0xf] }
 0x1d2   :  { %1766 = vmatpush.bf16.msra.mxu1 %v2726_v2  ;;  %1792 = vmatpush.bf16.msra.mxu3 %v2730_v9  ;;  %v2663_v2 = vld [vmem:[#allocation10 + $0x50] sm:$0xf0] }
 0x1d3   :  { %v2666_v7 = vor.u32 %v3062_v0, %v2663_v2  ;;  %v1367_v0 = vld [vmem:[#allocation2 + $0x10] sm:$0xff]  ;;  %v3111_v2 = vld [vmem:[#allocation10 + $0x1cc] sm:$0xf] }
 0x1d4   :  { %1809 = vmatpush.bf16.msrb.mxu0 %v2794_v8  ;;  %v869_v8 = vperm.slane %v3663_v25, 3 }
 0x1d6   :  { %1767 = vmatpush.bf16.msra.mxu1 %v2710_v61  ;;  %1793 = vmatpush.bf16.msra.mxu3 %v2714_v26  ;;  %v3058_v61 = vld [vmem:[#allocation10 + $0x24] sm:$0xf]  ;;  %v2778_v26 = vor.u32 %v3090_v19, %v2775_v23  ;;  %v3107_v23 = vld [vmem:[#allocation10 + $0x1ac] sm:$0xf] }
 0x1d7   :  { %v2650_v20 = vor.u32 %v3058_v61, %v2647_v18  ;;  %v2719_v61 = vld [vmem:[#allocation10 + $0xb8] sm:$0xf0]  ;;  %v2830_v18 = vor.u32 %v3105_v15, %v2829_v5  ;;  %v3063_v5 = vld [vmem:[#allocation10 + $0x4c] sm:$0xf] }
 0x1d8   :  { %1810 = vmatpush.bf16.msrb.mxu0 %v2778_v26  ;;  %v2722_v19 = vor.u32 %v3075_v16, %v2719_v61  ;;  %v2701_v26 = vld [vmem:[#allocation10 + $0x88] sm:$0xf]  ;;  %v2671_v61 = vld [vmem:[#allocation10 + $0x58] sm:$0xf0] }
 0x1da   :  { %1768 = vmatpush.bf16.msra.mxu1 %v2694_v29  ;;  %1794 = vmatpush.bf16.msra.mxu3 %v2698_v34  ;;  %v2629_v29 = vld [vmem:[#allocation10] sm:$0xf]  ;;  %v3086_v34 = vld [vmem:[#allocation10 + $0x104] sm:$0xf] }
 0x1db   :  { %v2630_v45 = vor.u32 %v3056_v30, %v2629_v29  ;;  %v3101_v29 = vld [vmem:[#allocation10 + $0x174] sm:$0xf0] }
 0x1dd   :  { %1254 = vmatmul.bf16.vlgmr.msrb.gmra.mxu1 %v794_v50  ;;  %1280 = vmatmul.bf16.vlgmr.msrb.gmra.mxu3 %v794_v50  ;;  %v2789_v50 = vld [vmem:[#allocation10 + $0x140] sm:$0xf] }
 0x1de   :  { %1795 = vmatpush.bf16.msra.mxu3 %v2682_v52 }
 0x1e2   :  { %1796 = vmatpush.bf16.msra.mxu3 %v2666_v7  ;;  %v3672_v7 = vpack.c.bf16 %v1367_v0, %v1367_v0 }
 0x1e6   :  { %1797 = vmatpush.bf16.msra.mxu3 %v2650_v20 }
 0x21c   :  { %v3652_v49 = vpop.f32.mrf.mxu0 }
 0x21d   :  { %v3654_v43 = vpop.f32.mrf.mxu2 }
 0x224   :  { %v1244_v44 = vpop.f32.mrf.mxu0 }
 0x225   :  { %v1218_v46 = vpop.f32.mrf.mxu2  ;;  %v2678_v44 = vor.u32 %v3068_v42, %v2677_v41  ;;  %v3113_v42 = vld [vmem:[#allocation10 + $0x1d4] sm:$0xf0] }
 0x226   :  { %v3096_v46 = vld [vmem:[#allocation10 + $0x14c] sm:$0xf0] }
 0x227   :  { %v2790_v51 = vor.u32 %v3096_v46, %v2789_v50  ;;  %1769 = vmatpush.bf16.msra.mxu1 %v2678_v44  ;;  %v3083_v50 = vld [vmem:[#allocation10 + $0xec] sm:$0xf] }
 0x228   :  { %v2754_v54 = vor.u32 %v3083_v50, %v2751_v47  ;;  %v3069_v47 = vld [vmem:[#allocation10 + $0x74] sm:$0xf0] }
 0x229   :  { %1783 = vmatpush.bf16.msra.mxu2 %v2790_v51  ;;  %v2879_v51 = vld [vmem:[#allocation10 + $0x1f8] sm:$0xf0] }
 0x22b   :  { %1770 = vmatpush.bf16.msra.mxu1 %v2662_v60  ;;  %v3079_v60 = vld [vmem:[#allocation10 + $0xcc] sm:$0xf] }
 0x22d   :  { %1784 = vmatpush.bf16.msra.mxu2 %v2774_v1  ;;  %v2738_v1 = vor.u32 %v3079_v60, %v2735_v63  ;;  %v3099_v60 = vld [vmem:[#allocation10 + $0x16c] sm:$0xf] }
 0x22f   :  { %1771 = vmatpush.bf16.msra.mxu1 %v2646_v14  ;;  %v2718_v14 = vor.u32 %v3077_v10, %v2717_v4  ;;  %v3093_v10 = vld [vmem:[#allocation10 + $0x134] sm:$0xf0] }
 0x231   :  { %1785 = vmatpush.bf16.msra.mxu2 %v2758_v17  ;;  %v868_v17 = vperm.slane %v3663_v25, 2 }
 0x232   :  { %v3658_v12 = vpop.f32.mrf.mxu2 }
 0x233   :  { %1772 = vmatpush.bf16.msra.mxu1 %v2630_v45  ;;  %v2702_v45 = vor.u32 %v3073_v22, %v2701_v26 }
 0x234   :  { %1786 = vmatmul.bf16.vlgmr.msra.gmra.mxu2 %v3672_v7 }
 0x235   :  { %1830 = vmatpush.bf16.msrb.mxu2 %v2878_v6 }
 0x23a   :  { %v1270_v40 = vpop.f32.mrf.mxu2 }
 0x23b   :  { %v3085_v40 = vld [vmem:[#allocation10 + $0xf4] sm:$0xf0] }
 0x23c   :  { %v3656_v11 = vpop.f32.mrf.mxu0  ;;  %v2750_v41 = vor.u32 %v3085_v40, %v2749_v39  ;;  %v2814_v39 = vor.u32 %v3101_v29, %v2813_v27  ;;  %v2765_v27 = vld [vmem:[#allocation10 + $0x108] sm:$0xf]  ;;  %v2655_v29 = vld [vmem:[#allocation10 + $0x38] sm:$0xf0] }
 0x23e   :  { %1817 = vmatpush.bf16.msrb.mxu1 %v2750_v41  ;;  %v2831_v41 = vld [vmem:[#allocation10 + $0x198] sm:$0xf0] }
 0x244   :  { %v1296_v38 = vpop.f32.mrf.mxu0 }
 0x245   :  { %v2762_v38 = vor.u32 %v3086_v34, %v2759_v35  ;;  %v2703_v34 = vld [vmem:[#allocation10 + $0x98] sm:$0xf0]  ;;  %v3103_v35 = vld [vmem:[#allocation10 + $0x18c] sm:$0xf] }
 0x247   :  { %1811 = vmatpush.bf16.msrb.mxu0 %v2762_v38 }
 0x24a   :  { %v1203_v55 = vpop.f32.mrf.mxu1  ;;  %1812 = vmatmul.bf16.vlgmr.msrb.gmra.mxu0 %v3672_v7 }
 0x24b   :  { %v1204_v57 = vadd.f32 %v1203_v55, %v866_v37  ;;  %v2634_v37 = vor.u32 %v3054_v32, %v2631_v33  ;;  %v2882_v55 = vor.u32 %v3115_v48, %v2879_v51  ;;  %v3071_v33 = vld [vmem:[#allocation10 + $0x8c] sm:$0xf]  ;;  %v2797_v48 = vld [vmem:[#allocation10 + $0x148] sm:$0xf] }
 0x24c   :  { %v2706_v40 = vor.u32 %v3071_v33, %v2703_v34  ;;  %v798_v33 = vld [vmem:[#allocation5 + $0x8] sm:$0xff] }
 0x24d   :  { %v1217_v62 = vadd.f32 %v3654_v43, %v1204_v57  ;;  %1798 = vmatpush.bf16.msra.mxu3 %v2634_v37  ;;  %v3081_v57 = vld [vmem:[#allocation10 + $0xd4] sm:$0xf0]  ;;  %1856 = vmatpush.bf16.msra.mxu0 %v2882_v55 }
 0x24f   :  { %v2624_v9 = vmul.f32 -1.442695, %v1217_v62  ;;  %v2846_v62 = vor.u32 %v3109_v59, %v2845_v21  ;;  %v2687_v59 = vld [vmem:[#allocation10 + $0x78] sm:$0xf0] }
 0x250   :  { %v1229_v13 = vpop.f32.mrf.mxu3 }
 0x251   :  { %3161 = vpow2.f32 %v2624_v9  ;;  %v1230_v43 = vadd.f32 %v1229_v13, %v867_v58  ;;  %v2734_v58 = vor.u32 %v3081_v57, %v2733_v56  ;;  %1843 = vmatpush.bf16.msrb.mxu3 %v2754_v54  ;;  %v2866_v9 = vor.u32 %v3111_v2, %v2863_v3  ;;  %v3097_v56 = vld [vmem:[#allocation10 + $0x154] sm:$0xf0]  ;;  %v3067_v57 = vld [vmem:[#allocation10 + $0x6c] sm:$0xf]  ;;  %v2781_v2 = vld [vmem:[#allocation10 + $0x128] sm:$0xf] }
 0x252   :  { %v1205_v24 = vpop.f32.mrf.mxu1  ;;  %v2798_v21 = vor.u32 %v3097_v56, %v2797_v48  ;;  %v2782_v16 = vor.u32 %v3093_v10, %v2781_v2 }
 0x253   :  { %v1243_v28 = vadd.f32 %v3652_v49, %v1230_v43  ;;  %v2861_v49 = vld [vmem:[#allocation10 + $0x1c8] sm:$0xf]  ;;  %1818 = vmatpush.bf16.msrb.mxu1 %v2734_v58  ;;  %1857 = vmatpush.bf16.msra.mxu0 %v2866_v9  ;;  %v2847_v24 = vld [vmem:[#allocation10 + $0x1b8] sm:$0xf0] }
 0x254   :  { %v2862_v46 = vor.u32 %v3113_v42, %v2861_v49  ;;  %v2850_v20 = vor.u32 %v3107_v23, %v2847_v24  ;;  %v2653_v23 = vld [vmem:[#allocation10 + $0x28] sm:$0xf]  ;;  %v3061_v24 = vld [vmem:[#allocation10 + $0x34] sm:$0xf0] }
 0x255   :  { %v2625_v36 = vmul.f32 -1.442695, %v1243_v28  ;;  %1844 = vmatpush.bf16.msrb.mxu3 %v2738_v1  ;;  %v3065_v1 = vld [vmem:[#allocation10 + $0x54] sm:$0xf0] }
 0x256   :  { %1831 = vmatpush.bf16.msrb.mxu2 %v2862_v46  ;;  %v2685_v46 = vld [vmem:[#allocation10 + $0x68] sm:$0xf] }
 0x257   :  { %v3162_v44 = vpop.eup %3161  ;;  %3163 = vpow2.f32 %v2625_v36  ;;  %1819 = vmatpush.bf16.msrb.mxu1 %v2718_v14  ;;  %1858 = vmatpush.bf16.msra.mxu0 %v2850_v20  ;;  %v2686_v55 = vor.u32 %v3069_v47, %v2685_v46  ;;  %v2767_v46 = vld [vmem:[#allocation10 + $0x118] sm:$0xf0] }
 0x258   :  { %v3669_v52 = vadd.f32 1.0, %v3162_v44  ;;  %v1231_v53 = vpop.f32.mrf.mxu3  ;;  %v2834_v44 = vor.u32 %v3103_v35, %v2831_v41  ;;  %v3057_v41 = vld [vmem:[#allocation10 + $0x14] sm:$0xf0] }
 0x259   :  { %1845 = vmatpush.bf16.msrb.mxu3 %v2722_v19  ;;  %v2799_v19 = vld [vmem:[#allocation10 + $0x158] sm:$0xf0] }
 0x25a   :  { %3165 = vrcp.f32 %v3669_v52  ;;  %v1255_v31 = vpop.f32.mrf.mxu1  ;;  %1832 = vmatpush.bf16.msrb.mxu2 %v2846_v62  ;;  %v1311_v25 = vand.u32 2147483647, %v3669_v52  ;;  %v1313_v37 = vand.u32 2147483648, %v3669_v52  ;;  %vm1307_vm0 = vweird.f32 %v3669_v52  ;;  %v2669_v62 = vld [vmem:[#allocation10 + $0x48] sm:$0xf]  ;;  %v3125_v14 = vld [vmem:[#allocation11 + $0x38] sm:$0xff] }
 0x25b   :  { %v1256_v36 = vadd.f32 %v1255_v31, %v868_v17  ;;  %1820 = vmatpush.bf16.msrb.mxu1 %v2702_v45  ;;  %1859 = vmatpush.bf16.msra.mxu0 %v2834_v44  ;;  %v2815_v31 = vld [vmem:[#allocation10 + $0x178] sm:$0xf0]  ;;  %v2670_v15 = vor.u32 %v3065_v1, %v2669_v62  ;;  %v3095_v17 = vld [vmem:[#allocation10 + $0x14c] sm:$0xf] }
 0x25c   :  { %vm3690_vm14 = vcmp.eq.f32.partialorder %v1311_v25, 8.507059e+37  ;;  %v1314_v3 = vor.u32 1.1754944e-38, %v1313_v37  ;;  %v2818_v9 = vor.u32 %v3099_v60, %v2815_v31  ;;  %v2802_v22 = vor.u32 %v3095_v17, %v2799_v19  ;;  %v3089_v25 = vld [vmem:[#allocation10 + $0x114] sm:$0xf0]  ;;  %v2637_v37 = vld [vmem:[#allocation10 + $0x8] sm:$0xf] }
 0x25d   :  { %v3164_v13 = vpop.eup %3163  ;;  %1846 = vmatpush.bf16.msrb.mxu3 %v2706_v40  ;;  %v3087_v44 = vld [vmem:[#allocation10 + $0x10c] sm:$0xf] }
 0x25e   :  { %v3675_v43 = vadd.f32 1.0, %v3164_v13  ;;  %1833 = vmatpush.bf16.msrb.mxu2 %v2830_v18  ;;  %v2674_v18 = vor.u32 %v3063_v5, %v2671_v61  ;;  %v2770_v56 = vor.u32 %v3087_v44, %v2767_v46  ;;  %v3124_v61 = vld [vmem:[#allocation11 + $0x30] sm:$0xff] }
 0x25f   :  { %1821 = vmatpush.bf16.msrb.mxu1 %v2686_v55  ;;  %1860 = vmatpush.bf16.msra.mxu0 %v2818_v9 }
 0x260   :  { %v3680_v28 = vpop.eup %3165  ;;  %3167 = vrcp.f32 %v3675_v43  ;;  %v1281_v6 = vpop.f32.mrf.mxu3  ;;  %v1330_v42 = vand.u32 2147483647, %v3675_v43  ;;  %vm1326_vm4 = vweird.f32 %v3675_v43 }
 0x261   :  { %v1303_v30 = vmul.f32 %v3680_v28, %v3669_v52  ;;  %v1282_v32 = vadd.f32 %v1281_v6, %v869_v8  ;;  %vm1308_vm15 = vweird.f32 %v3680_v28  ;;  %v2690_v8 = vor.u32 %v3067_v57, %v2687_v59  ;;  %v3059_v6 = vld [vmem:[#allocation10 + $0x2c] sm:$0xf] }
 0x262   :  { %v1257_v38 = vpop.f32.mrf.mxu1  ;;  %1834 = vmatpush.bf16.msrb.mxu2 %v2814_v39  ;;  %vm3705_vm1 = vmor %vm1307_vm0, %vm1308_vm15  ;;  %vm3709_vm2 = vcmp.eq.f32.partialorder %v1330_v42, 8.507059e+37  ;;  %v2658_v39 = vor.u32 %v3059_v6, %v2655_v29 }
 0x263   :  { %v1304_v49 = vsub.f32 1.0, %v1303_v30  ;;  %v1295_v50 = vadd.f32 %v3656_v11, %v1282_v32  ;;  %v1269_v11 = vadd.f32 %v3658_v12, %v1256_v36  ;;  %v1332_v12 = vand.u32 2147483648, %v3675_v43  ;;  %1847 = vmatpush.bf16.msrb.mxu3 %v2690_v8  ;;  %v3091_v30 = vld [vmem:[#allocation10 + $0x12c] sm:$0xf]  ;;  %v2783_v32 = vld [vmem:[#allocation10 + $0x138] sm:$0xf0]  ;;  %1822 = vmatpush.bf16.msrb.mxu1 %v2670_v15 }
 0x264   :  { %v2654_v36 = vor.u32 %v3061_v24, %v2653_v23  ;;  %1861 = vmatpush.bf16.msra.mxu0 %v2802_v22  ;;  %v2786_v40 = vor.u32 %v3091_v30, %v2783_v32  ;;  %v3123_v24 = vld [vmem:[#allocation11 + $0x28] sm:$0xff]  ;;  %v3121_v30 = vld [vmem:[#allocation11 + $0x18] sm:$0xff] }
 0x265   :  { %v1305_v51 = vmul.f32 %v3680_v28, %v1304_v49  ;;  %v2626_v54 = vmul.f32 -1.442695, %v1295_v50  ;;  %v1333_v35 = vor.u32 1.1754944e-38, %v1332_v12  ;;  %v3055_v49 = vld [vmem:[#allocation10 + $0xc] sm:$0xf] }
 0x266   :  { %v3694_v58 = vpop.eup %3167  ;;  %1835 = vmatpush.bf16.msrb.mxu2 %v2798_v21  ;;  %v2639_v50 = vld [vmem:[#allocation10 + $0x18] sm:$0xf0] }
 0x267   :  { %v1322_v63 = vmul.f32 %v3694_v58, %v3675_v43  ;;  %v1306_v0 = vadd.f32 %v3680_v28, %v1305_v51  ;;  %3169 = vpow2.f32 %v2626_v54  ;;  %vm1327_vm3 = vweird.f32 %v3694_v58  ;;  %1848 = vmatpush.bf16.msrb.mxu3 %v2674_v18  ;;  %1823 = vmatpush.bf16.msrb.mxu1 %v2654_v36  ;;  %v3119_v36 = vld [vmem:[#allocation11 + $0x8] sm:$0xff] }
 0x268   :  { %v1283_v4 = vpop.f32.mrf.mxu3  ;;  %3171 = vtanh.f32 %v1269_v11  ;;  %vm1328_vm5 = vmor %vm1326_vm4, %vm1327_vm3  ;;  %v2638_v54 = vor.u32 %v3057_v41, %v2637_v37  ;;  %1862 = vmatpush.bf16.msra.mxu0 %v2786_v40  ;;  %v2642_v55 = vor.u32 %v3055_v49, %v2639_v50 }
 0x269   :  { %v1323_v13 = vsub.f32 1.0, %v1322_v63  ;;  %v1310_v26 = vsel %vm3705_vm1, %v3680_v28, %v1306_v0  ;;  %v2766_v28 = vor.u32 %v3089_v25, %v2765_v27  ;;  %v3122_v27 = vld [vmem:[#allocation11 + $0x20] sm:$0xff] }
 0x26a   :  { %1836 = vmatpush.bf16.msrb.mxu2 %v2782_v16  ;;  %v1315_v38 = vsel %vm3690_vm14, %v1314_v3, %v1310_v26 }
 0x26b   :  { %v1324_v20 = vmul.f32 %v3694_v58, %v1323_v13  ;;  %1849 = vmatpush.bf16.msrb.mxu3 %v2658_v39  ;;  %1824 = vmatpush.bf16.msrb.mxu1 %v2638_v54  ;;  %v1435_v13 = vld [vmem:[%s3759_s9] sm:$0xf]  ;;  %v3118_v39 = vld [vmem:[#allocation11] sm:$0xff] }
 0x26c   :  { %1863 = vmatpush.bf16.msra.mxu0 %v2770_v56  ;;  %v1437_v15 = vperm.slane %v1435_v13, 0  ;;  %v1438_v23 = vperm.slane %v1435_v13, 1  ;;  %v1440_v37 = vperm.slane %v1435_v13, 3 }
 0x26d   :  { %v3170_v45 = vpop.eup %3169  ;;  %v1325_v34 = vadd.f32 %v3694_v58, %v1324_v20 }
 0x26e   :  { %v1340_v43 = vadd.f32 1.0, %v3170_v45  ;;  %v3172_v47 = vpop.eup %3171  ;;  %1837 = vmatpush.bf16.msrb.mxu2 %v2766_v28 }
 0x26f   :  { %v1329_v42 = vsel %vm1328_vm5, %v3694_v58, %v1325_v34  ;;  %v1357_v53 = vmul.f32 %v3172_v47, %v1315_v38  ;;  %1850 = vmatpush.bf16.msrb.mxu3 %v2642_v55  ;;  %1864 = vmatmul.bf16.vlgmr.msra.gmra.mxu0 %v3672_v7  ;;  %v3120_v34 = vld [vmem:[#allocation11 + $0x10] sm:$0xff] }
 0x270   :  { %v1334_v48 = vsel %vm3709_vm2, %v1333_v35, %v1329_v42  ;;  %3173 = vrcp.f32 %v1340_v43  ;;  %v1352_v59 = vand.u32 2147483648, %v1340_v43  ;;  %v1350_v31 = vand.u32 2147483647, %v1340_v43 }
 0x271   :  { %v1356_v51 = vmul.f32 %v1334_v48, %v798_v33  ;;  %1838 = vmatmul.bf16.vlgmr.msrb.gmra.mxu2 %v3672_v7  ;;  %vm1346_vm7 = vweird.f32 %v1340_v43 }
 0x272   :  { %v1353_v0 = vor.u32 1.1754944e-38, %v1352_v59  ;;  %vm1351_vm9 = vcmp.eq.f32.partialorder %v1350_v31, 8.507059e+37 }
 0x273   :  { %v1358_v57 = vadd.f32 %v1357_v53, %v1356_v51 }
 0x275   :  { %1364 = vst [vmem:[#allocation16 + $0x8] sm:$0xff] %v1358_v57  ;;  %3175 = vtanh.f32 %v1358_v57 }
 0x276   :  { %v3174_v58 = vpop.eup %3173 }
 0x277   :  { %v1342_v11 = vmul.f32 %v3174_v58, %v1340_v43  ;;  %vm1347_vm6 = vweird.f32 %v3174_v58  ;;  %v1439_v43 = vperm.slane %v1435_v13, 2 }
 0x278   :  { %vm1348_vm8 = vmor %vm1346_vm7, %vm1347_vm6 }
 0x279   :  { %v1343_v21 = vsub.f32 1.0, %v1342_v11 }
 0x27b   :  { %v1344_v60 = vmul.f32 %v3174_v58, %v1343_v21  ;;  %v3176_v1 = vpop.eup %3175 }
 0x27d   :  { %v1345_v63 = vadd.f32 %v3174_v58, %v1344_v60 }
 0x27f   :  { %v1349_v62 = vsel %vm1348_vm8, %v3174_v58, %v1345_v63 }
 0x280   :  { %v1354_v2 = vsel %vm1351_vm9, %v1353_v0, %v1349_v62 }
 0x281   :  { %v1360_v12 = vmul.f32 %v3176_v1, %v1354_v2  ;;  %v1369_v2 = vld [vmem:[#allocation5 + $0x10] sm:$0xff] }
 0x283   :  { %v1365_v3 = vpack.c.bf16 %v1360_v12, %v1360_v12  ;;  %1362 = vst [vmem:[#allocation14 + $0x8] sm:$0xff] %v1360_v12 }
 0x285   :  { %1773 = vmatmul.bf16.vlgmr.msra.gmra.mxu1 %v1365_v3  ;;  %1799 = vmatmul.bf16.vlgmr.msra.gmra.mxu3 %v1365_v3 }
 0x286   :  { %2005 = vmatpush.bf16.msra.mxu1 %v3125_v14 }
 0x28a   :  { %2006 = vmatpush.bf16.msra.mxu1 %v3124_v61 }
 0x28e   :  { %2007 = vmatpush.bf16.msra.mxu1 %v3123_v24 }
 0x292   :  { %2008 = vmatpush.bf16.msra.mxu1 %v3122_v27  ;;  %v3144_v27 = vld [vmem:[%s3761_s11] ss:$0 sm:$0xff] }
 0x295   :  { %1825 = vmatmul.bf16.vlgmr.msrb.gmra.mxu1 %v1365_v3  ;;  %1851 = vmatmul.bf16.vlgmr.msrb.gmra.mxu3 %v1365_v3 }
 0x296   :  { %2009 = vmatpush.bf16.msra.mxu1 %v3121_v30 }
 0x29a   :  { %2010 = vmatpush.bf16.msra.mxu1 %v3120_v34 }
 0x29e   :  { %2011 = vmatpush.bf16.msra.mxu1 %v3119_v36 }
 0x2a2   :  { %2012 = vmatpush.bf16.msra.mxu1 %v3118_v39 }
 0x2b7   :  { %v1787_v4 = vpop.f32.mrf.mxu2 }
 0x2bf   :  { %v1789_v9 = vpop.f32.mrf.mxu2 }
 0x2c7   :  { %v1813_v7 = vpop.f32.mrf.mxu0 }
 0x2cf   :  { %v1815_v8 = vpop.f32.mrf.mxu0 }
 0x2ec   :  { %v1865_v10 = vpop.f32.mrf.mxu0 }
 0x2f4   :  { %v1839_v5 = vpop.f32.mrf.mxu2  ;;  %v1867_v52 = vpop.f32.mrf.mxu0 }
 0x2fc   :  { %v1841_v16 = vpop.f32.mrf.mxu2 }
 0x302   :  { %v1774_v17 = vpop.f32.mrf.mxu1 }
 0x303   :  { %v1775_v18 = vadd.f32 %v1774_v17, %v1437_v15 }
 0x305   :  { %v1788_v19 = vadd.f32 %v1787_v4, %v1775_v18 }
 0x307   :  { %v2883_v20 = vmul.f32 -1.442695, %v1788_v19 }
 0x308   :  { %v1800_v26 = vpop.f32.mrf.mxu3 }
 0x309   :  { %3177 = vpow2.f32 %v2883_v20  ;;  %v1801_v22 = vadd.f32 %v1800_v26, %v1438_v23 }
 0x30a   :  { %v1776_v25 = vpop.f32.mrf.mxu1 }
 0x30b   :  { %v1814_v6 = vadd.f32 %v1813_v7, %v1801_v22 }
 0x30d   :  { %v2884_v29 = vmul.f32 -1.442695, %v1814_v6 }
 0x30f   :  { %v3178_v32 = vpop.eup %3177  ;;  %3179 = vpow2.f32 %v2884_v29 }
 0x310   :  { %v1872_v45 = vadd.f32 1.0, %v3178_v32  ;;  %v1802_v33 = vpop.f32.mrf.mxu3 }
 0x312   :  { %3181 = vrcp.f32 %v1872_v45  ;;  %v1826_v35 = vpop.f32.mrf.mxu1  ;;  %v1884_v57 = vand.u32 2147483648, %v1872_v45  ;;  %vm1878_vm11 = vweird.f32 %v1872_v45  ;;  %v1882_v21 = vand.u32 2147483647, %v1872_v45 }
 0x313   :  { %v1827_v50 = vadd.f32 %v1826_v35, %v1439_v43 }
 0x314   :  { %v1885_v0 = vor.u32 1.1754944e-38, %v1884_v57  ;;  %vm1883_vm15 = vcmp.eq.f32.partialorder %v1882_v21, 8.507059e+37 }
 0x315   :  { %v3180_v28 = vpop.eup %3179  ;;  %v1840_v54 = vadd.f32 %v1839_v5, %v1827_v50 }
 0x316   :  { %v1891_v38 = vadd.f32 1.0, %v3180_v28 }
 0x318   :  { %v3182_v40 = vpop.eup %3181  ;;  %3183 = vrcp.f32 %v1891_v38  ;;  %v1852_v41 = vpop.f32.mrf.mxu3  ;;  %v1903_v59 = vand.u32 2147483648, %v1891_v38  ;;  %v1901_v63 = vand.u32 2147483647, %v1891_v38  ;;  %vm1897_vm14 = vweird.f32 %v1891_v38 }
 0x319   :  { %v1874_v49 = vmul.f32 %v3182_v40, %v1872_v45  ;;  %v1853_v42 = vadd.f32 %v1852_v41, %v1440_v37  ;;  %vm1879_vm10 = vweird.f32 %v3182_v40 }
 0x31a   :  { %v1828_v44 = vpop.f32.mrf.mxu1  ;;  %vm1880_vm12 = vmor %vm1878_vm11, %vm1879_vm10  ;;  %v1904_v3 = vor.u32 1.1754944e-38, %v1903_v59  ;;  %vm1902_vm1 = vcmp.eq.f32.partialorder %v1901_v63, 8.507059e+37 }
 0x31b   :  { %v1875_v46 = vsub.f32 1.0, %v1874_v49  ;;  %v1866_v47 = vadd.f32 %v1865_v10, %v1853_v42 }
 0x31d   :  { %v1876_v48 = vmul.f32 %v3182_v40, %v1875_v46  ;;  %v2885_v51 = vmul.f32 -1.442695, %v1866_v47 }
 0x31e   :  { %v3184_v53 = vpop.eup %3183 }
 0x31f   :  { %v1893_v55 = vmul.f32 %v3184_v53, %v1891_v38  ;;  %v1877_v56 = vadd.f32 %v3182_v40, %v1876_v48  ;;  %3185 = vpow2.f32 %v2885_v51  ;;  %vm1898_vm13 = vweird.f32 %v3184_v53 }
 0x320   :  { %v1854_v58 = vpop.f32.mrf.mxu3  ;;  %3187 = vtanh.f32 %v1840_v54  ;;  %vm1899_vm0 = vmor %vm1897_vm14, %vm1898_vm13 }
 0x321   :  { %v1894_v11 = vsub.f32 1.0, %v1893_v55  ;;  %v1881_v31 = vsel %vm1880_vm12, %v3182_v40, %v1877_v56 }
 0x322   :  { %v1886_v12 = vsel %vm1883_vm15, %v1885_v0, %v1881_v31 }
 0x323   :  { %v1895_v60 = vmul.f32 %v3184_v53, %v1894_v11 }
 0x325   :  { %v3186_v62 = vpop.eup %3185  ;;  %v1896_v1 = vadd.f32 %v3184_v53, %v1895_v60 }
 0x326   :  { %v1911_v7 = vadd.f32 1.0, %v3186_v62  ;;  %v3188_v8 = vpop.eup %3187 }
 0x327   :  { %v1900_v4 = vsel %vm1899_vm0, %v3184_v53, %v1896_v1  ;;  %v1928_v5 = vmul.f32 %v3188_v8, %v1886_v12 }
 0x328   :  { %v1905_v9 = vsel %vm1902_vm1, %v1904_v3, %v1900_v4  ;;  %3189 = vrcp.f32 %v1911_v7  ;;  %v1923_v16 = vand.u32 2147483648, %v1911_v7  ;;  %v1921_v17 = vand.u32 2147483647, %v1911_v7 }
 0x329   :  { %v1927_v10 = vmul.f32 %v1905_v9, %v1369_v2  ;;  %vm1917_vm3 = vweird.f32 %v1911_v7 }
 0x32a   :  { %v1924_v19 = vor.u32 1.1754944e-38, %v1923_v16  ;;  %vm1922_vm5 = vcmp.eq.f32.partialorder %v1921_v17, 8.507059e+37 }
 0x32b   :  { %v1929_v13 = vadd.f32 %v1928_v5, %v1927_v10 }
 0x32d   :  { %1935 = vst [vmem:[#allocation16 + $0x10] sm:$0xff] %v1929_v13  ;;  %3191 = vtanh.f32 %v1929_v13 }
 0x32e   :  { %v3190_v14 = vpop.eup %3189 }
 0x32f   :  { %v1913_v52 = vmul.f32 %v3190_v14, %v1911_v7  ;;  %vm1918_vm2 = vweird.f32 %v3190_v14 }
 0x330   :  { %vm1919_vm4 = vmor %vm1917_vm3, %vm1918_vm2 }
 0x331   :  { %v1914_v15 = vsub.f32 1.0, %v1913_v52 }
 0x333   :  { %v1915_v61 = vmul.f32 %v3190_v14, %v1914_v15  ;;  %v3192_v24 = vpop.eup %3191 }
 0x335   :  { %v1916_v18 = vadd.f32 %v3190_v14, %v1915_v61 }
 0x337   :  { %v1920_v23 = vsel %vm1919_vm4, %v3190_v14, %v1916_v18 }
 0x338   :  { %v1925_v20 = vsel %vm1922_vm5, %v1924_v19, %v1920_v23 }
 0x339   :  { %v1931_v26 = vmul.f32 %v3192_v24, %v1925_v20 }
 0x33b   :  { %v1936_v22 = vpack.c.bf16 %v1931_v26, %v1931_v26  ;;  %1933 = vst [vmem:[#allocation14 + $0x10] sm:$0xff] %v1931_v26 }
 0x33c   :  { %2042 = dma.vmem_to_hbm [thread:$0]  %s2035_s28, 384, %s2037_s10, [#allocation15], %s3422_s18, %s3422_s18, %s3423_s19  }
 0x33d   :  { %2013 = vmatmul.bf16.vlgmr.msra.gmra.mxu1 %v1936_v22  ;;  %2055 = dma.vmem_to_hbm [thread:$0]  %s2048_s17, 384, %s2050_s2, [#allocation15], %s3422_s18, %s3422_s18, %s3423_s19  }
 0x3ba   :  { %v2014_v25 = vpop.f32.mrf.mxu1 }
 0x3bb   :  { %v2015_v6 = vadd.f32 %v3144_v27, %v2014_v25 }
 0x3bd   :  { %2018 = vst [vmem:[#allocation13] sm:$0xff] %v2015_v6 }
 0x3be   :  { %2029 = dma.vmem_to_hbm [thread:$0]  %s2025_s23, 128, %s2027_s4, [#allocation4]  }
 0x3c2   :  { %v2016_v29 = vpop.f32.mrf.mxu1 }
 0x3c3   :  { %3417 = dma.done.wait [#allocation4], 128  }
 0x3c4   :  { %3418 = vsyncadd [#allocation4], 4294967168 }
 0x3c5   :  { %3419 = dma.done.wait [#allocation15], 768  }
 0x3c6   :  { %3420 = vsyncadd [#allocation15], 4294966528 }
 0x3c7   :  { %2068 = vsyncpa [#allocation3], 1 }
 0x3c8   :  { %2069 = vsyncpa [#allocation6], 1 }
 0x3c9   :  { %2070 = vsyncpa [#allocation9], 1 }
 0x3ca   :  { %2071 = vsyncpa [#allocation12], 1 }
 0x3cb   :  { %2072 = vsyncpa [#allocation4], 1 }
 0x3cc   :  { %2073 = vsyncpa [#allocation15], 1 }

</bundles_post_ra>
